<compile_context>
chip_gen: v5e
topology: v5e:2x2
jax: 0.10.0
libtpu: 0.0.40
codegen_flags: <defaults>
</compile_context>

<pallas_src>
import math
import numpy as np
import jax
import jax.numpy as jnp
from jax import lax
from jax.experimental import pallas as pl
from jax.experimental.pallas import tpu as pltpu

VOCAB = 64
EMBED = 64
MAX_LEN = 128
NUM_LAYERS = 2
NUM_HEADS = 2
HIDDEN = 128
LN_EPS = 1e-5
VOCAB_PAD = ((VOCAB + 127) // 128) * 128        # lane-dense logits store

# row indices inside the packed per-layer (L, 9, E) f32 slab
(GA_SA_OUT_B, GA_CA_CONST, GA_N1W, GA_N1B, GA_N2W,
 GA_N2B, GA_N3W, GA_N3B, GA_L2B) = range(9)


# ---------------------- shared math helpers (f32, used by the reference) ----------------------
def _layernorm(x, w, b):
    mu = jnp.mean(x, axis=-1, keepdims=True)
    var = jnp.mean((x - mu) ** 2, axis=-1, keepdims=True)
    return (x - mu) * lax.rsqrt(var + LN_EPS) * w + b


def _matmul_nt(a, b):
    # a @ b.T (f32, reference path)
    return lax.dot_general(a, b, (((1,), (1,)), ((), ())),
                           preferred_element_type=jnp.float32)


def _mha_ref(q_in, kv_in, in_w, in_b, out_w, out_b, mask):
    """PyTorch nn.MultiheadAttention semantics (packed in_proj, per-head softmax), f32."""
    S_q, E = q_in.shape
    hd = E // NUM_HEADS
    q = _matmul_nt(q_in, in_w[0:E, :]) + in_b[:, 0:E]
    k = _matmul_nt(kv_in, in_w[E:2 * E, :]) + in_b[:, E:2 * E]
    v = _matmul_nt(kv_in, in_w[2 * E:3 * E, :]) + in_b[:, 2 * E:3 * E]
    scale = 1.0 / math.sqrt(hd)
    out = jnp.zeros((S_q, E), jnp.float32)
    for h in range(NUM_HEADS):
        sl = slice(h * hd, (h + 1) * hd)
        qh, kh, vh = q[:, sl], k[:, sl], v[:, sl]
        s = _matmul_nt(qh, kh) * scale
        if mask is not None:
            s = jnp.where(mask, -1e30, s)
        m = jnp.max(s, axis=-1, keepdims=True)
        e = jnp.exp(s - m)
        p = e / jnp.sum(e, axis=-1, keepdims=True)
        ah = jnp.dot(p, vh, preferred_element_type=jnp.float32)
        out = out + _matmul_nt(ah, out_w[:, sl])
    return out + out_b


# ---------------------- in-kernel helpers (bf16 operands, f32 accumulate) ----------------------
def _mm_nt(a, b):
    # a @ b.T on the MXU with bf16 operands, f32 accumulation
    return lax.dot_general(a.astype(jnp.bfloat16), b.astype(jnp.bfloat16),
                           (((1,), (1,)), ((), ())),
                           preferred_element_type=jnp.float32)


def _mm_nn(a, b):
    # a @ b on the MXU with bf16 operands, f32 accumulation
    return lax.dot_general(a.astype(jnp.bfloat16), b.astype(jnp.bfloat16),
                           (((1,), (0,)), ((), ())),
                           preferred_element_type=jnp.float32)


# ---------------------- packed bf16 weight-slab layout (shared wrapper/kernel) ----------------------
def _wslab_offsets():
    offs = {"layers": []}
    r = 0
    offs["tok"] = r
    r += VOCAB
    for _ in range(NUM_LAYERS):
        d = {"in_w": r}
        r += 3 * EMBED
        d["out_w"] = r
        r += EMBED
        d["l1_w"] = r
        r += HIDDEN
        d["l2_wT"] = r
        r += HIDDEN
        offs["layers"].append(d)
    offs["fc"] = r
    r += VOCAB_PAD
    offs["total"] = r
    return offs


# ---------------------------------- Pallas kernel ----------------------------------
def gpt_kernel(ids_ref, w_ref, pos_ref, mask_ref, ln0_ref, ga_ref,
               sa_in_b_ref, l1_b_ref, fc_b_ref, out_ref):
    M, E = pos_ref.shape                                     # M = Bb * S fused rows
    V = VOCAB
    H = NUM_HEADS
    hd = E // H
    offs = _wslab_offsets()

    # token embedding: (M, V) one-hot against a lane-axis iota, single NN matmul
    ids = ids_ref[0]                                         # (M, 1) int32
    col = lax.broadcasted_iota(jnp.int32, (M, V), 1)
    onehot = (col == ids).astype(jnp.bfloat16)               # (M, V)
    tok = w_ref[offs["tok"]:offs["tok"] + V, :]              # (V, E) bf16
    x = _mm_nn(onehot, tok) + pos_ref[...]                   # (M, E) f32
    x = _layernorm(x, ln0_ref[0:1, :], ln0_ref[1:2, :])

    mask_bias = mask_ref[...]                                # (H*M, H*M) additive 0 / -1e30

    for l in range(NUM_LAYERS):                              # static unroll over layers
        lo = offs["layers"][l]
        in_w = w_ref[lo["in_w"]:lo["in_w"] + 3 * E, :]
        out_w = w_ref[lo["out_w"]:lo["out_w"] + E, :]
        l1_w = w_ref[lo["l1_w"]:lo["l1_w"] + HIDDEN, :]
        l2_wT = w_ref[lo["l2_wT"]:lo["l2_wT"] + HIDDEN, :]
        ga = ga_ref[l]                                       # (9, E) f32, one load per layer

        # 1) masked self-attention (fused QKV, fused heads) + residual + norm1
        qkv = (_mm_nt(x, in_w) + sa_in_b_ref[l]).astype(jnp.bfloat16)   # (M, 3E); 1/sqrt(hd) prefolded
        qs = jnp.concatenate([qkv[:, h * hd:(h + 1) * hd] for h in range(H)], axis=0)          # (H*M, hd)
        ks = jnp.concatenate([qkv[:, E + h * hd:E + (h + 1) * hd] for h in range(H)], axis=0)
        vs = jnp.concatenate([qkv[:, 2 * E + h * hd:2 * E + (h + 1) * hd] for h in range(H)], axis=0)
        s = _mm_nt(qs, ks) + mask_bias                       # (H*M, H*M) f32
        mx = jnp.max(s, axis=-1, keepdims=True)
        e = jnp.exp(s - mx)
        p = e * pl.reciprocal(jnp.sum(e, axis=-1, keepdims=True), approx=True)
        o = _mm_nn(p.astype(jnp.bfloat16), vs)               # (H*M, hd) f32
        attn = jnp.concatenate([o[h * M:(h + 1) * M, :] for h in range(H)], axis=1)             # (M, E)
        a = _mm_nt(attn, out_w) + ga[GA_SA_OUT_B:GA_SA_OUT_B + 1, :]
        x = _layernorm(x + a, ga[GA_N1W:GA_N1W + 1, :], ga[GA_N1B:GA_N1B + 1, :])

        # 2) cross-attention against the all-zeros memory folds to a constant row
        x = _layernorm(x + ga[GA_CA_CONST:GA_CA_CONST + 1, :],
                       ga[GA_N2W:GA_N2W + 1, :], ga[GA_N2B:GA_N2B + 1, :])

        # 3) feed-forward (relu) + residual + norm3
        h1 = jnp.maximum(_mm_nt(x, l1_w) + l1_b_ref[l], 0.0)
        f = _mm_nn(h1, l2_wT) + ga[GA_L2B:GA_L2B + 1, :]
        x = _layernorm(x + f, ga[GA_N3W:GA_N3W + 1, :], ga[GA_N3B:GA_N3B + 1, :])

    # lane-dense logits store: fc weights are zero-padded to VOCAB_PAD rows
    fc_w = w_ref[offs["fc"]:offs["fc"] + VOCAB_PAD, :]
    out_ref[...] = _mm_nt(x, fc_w) + fc_b_ref[...]           # (M, VOCAB_PAD)


# ---------------------------------- wrapper ----------------------------------
def _num_tensorcores_per_chip():
    # Only v7x has 2 TensorCores per chip; v5e/v6e have one.
    try:
        kind = jax.devices()[0].device_kind.lower()
    except Exception:
        return 1
    return 2 if ("v7" in kind or "7x" in kind) else 1


def _pack_params(params, S, Bb):
    """Pack the many small parameter arrays into a few DMA slabs."""
    E, L, V = EMBED, NUM_LAYERS, VOCAB
    scale = 1.0 / math.sqrt(E // NUM_HEADS)

    # bf16 weight slab: every matmul weight, 64 lanes wide, row-concatenated.
    pieces = [params["tok_emb"]]
    for l in range(L):
        in_w = params["sa_in_w"][l].at[0:E, :].multiply(scale)   # fold 1/sqrt(hd) into Q rows
        pieces += [in_w, params["sa_out_w"][l], params["l1_w"][l], params["l2_w"][l].T]
    fc_w = jnp.zeros((VOCAB_PAD, E), jnp.float32).at[:V].set(params["fc_w"])
    pieces.append(fc_w)
    w_slab = jnp.concatenate(pieces, axis=0).astype(jnp.bfloat16)
    assert w_slab.shape[0] == _wslab_offsets()["total"]

    # exact constant-fold of cross-attention against zeros memory:
    # k = b_k, v = b_v for every position -> uniform softmax -> out = b_v @ Wo.T + b_o
    ca_const = jnp.einsum("lqe,loe->lqo", params["ca_in_b"][:, :, 2 * E:3 * E],
                          params["ca_out_w"], precision=lax.Precision.HIGHEST) \
        + params["ca_out_b"]                                     # (L, 1, E)

    # f32 per-layer row-vector slab (L, 9, E)
    ga = jnp.stack([params["sa_out_b"][:, 0, :], ca_const[:, 0, :],
                    params["n1_w"][:, 0, :], params["n1_b"][:, 0, :],
                    params["n2_w"][:, 0, :], params["n2_b"][:, 0, :],
                    params["n3_w"][:, 0, :], params["n3_b"][:, 0, :],
                    params["l2_b"][:, 0, :]], axis=1)

    ln0 = jnp.concatenate([params["ln0_w"], params["ln0_b"]], axis=0)     # (2, E)
    sa_in_b = params["sa_in_b"].at[:, :, 0:E].multiply(scale)             # Q-bias scale fold
    l1_b = params["l1_b"]                                                 # (L, 1, HIDDEN)
    fc_b = jnp.zeros((1, VOCAB_PAD), jnp.float32).at[:, :V].set(params["fc_b"])
    pos = jnp.tile(params["pos_emb"][:S], (Bb, 1))                        # (Bb*S, E)
    return w_slab, pos, ln0, ga, sa_in_b, l1_b, fc_b


def _attn_mask_bias(M, S, H):
    # additive mask over the head-stacked, batch-fused rows: causal, same-sequence, same-head
    ri = jnp.arange(M)[:, None]
    ci = jnp.arange(M)[None, :]
    blocked = (ci > ri) | ((ri // S) != (ci // S))
    base = jnp.where(blocked, -1e30, 0.0).astype(jnp.float32)   # (M, M)
    full = jnp.full((H * M, H * M), -1e30, jnp.float32)         # cross-head -> masked
    for h in range(H):
        full = full.at[h * M:(h + 1) * M, h * M:(h + 1) * M].set(base)
    return full


def gpt_forward(ids, params):
    B, S = ids.shape

    # chip-aware block split: split only on v7x (2 TCs); on single-TC chips a
    # multi-step grid is a purely serial loop with extra per-step overhead.
    tc = _num_tensorcores_per_chip()
    if tc >= 2 and B % 2 == 0 and ((B // 2) * S) % 8 == 0:
        n_blocks = 2
    else:
        n_blocks = 1
    Bb = B // n_blocks
    M = Bb * S
    # TODO(synk): if B*S ever grows so the (NUM_HEADS*M)^2 score matrix stresses
    # VMEM (M beyond ~1-2K rows), add more grid blocks / tile the KV dimension.

    w_slab, pos, ln0, ga, sa_in_b, l1_b, fc_b = _pack_params(params, S, Bb)
    mask_bias = _attn_mask_bias(M, S, NUM_HEADS)
    ids_blk = ids.astype(jnp.int32).reshape(n_blocks, M, 1)

    inputs = [ids_blk, w_slab, pos, mask_bias, ln0, ga, sa_in_b, l1_b, fc_b]

    def full_spec(a):
        r = a.ndim
        return pl.BlockSpec(a.shape, lambda b, _r=r: (0,) * _r)

    in_specs = [pl.BlockSpec((1, M, 1), lambda b: (b, 0, 0))]
    in_specs += [full_spec(a) for a in inputs[1:]]
    out_spec = pl.BlockSpec((M, VOCAB_PAD), lambda b: (b, 0))

    out = pl.pallas_call(
        gpt_kernel,
        out_shape=jax.ShapeDtypeStruct((B * S, VOCAB_PAD), jnp.float32),
        grid_spec=pltpu.PrefetchScalarGridSpec(
            num_scalar_prefetch=0,
            grid=(n_blocks,),
            in_specs=in_specs,
            out_specs=out_spec,
        ),
        compiler_params=pltpu.CompilerParams(
            dimension_semantics=("parallel",)),
    )(*inputs)

    return out.reshape(B, S, VOCAB_PAD)[:, :, :VOCAB]


# ----------------------------- deterministic parameters -----------------------------
def init_params(key):
    ks = jax.random.split(key, 16)

    def nrm(k, shape, scale=0.02):
        return scale * jax.random.normal(k, shape, jnp.float32)

    L, E, V, Hid = NUM_LAYERS, EMBED, VOCAB, HIDDEN
    p = {}
    p["tok_emb"] = nrm(ks[0], (V, E), 1.0)          # nn.Embedding ~ N(0,1)
    p["pos_emb"] = nrm(ks[1], (MAX_LEN, E), 1.0)
    p["ln0_w"] = jnp.ones((1, E), jnp.float32)
    p["ln0_b"] = jnp.zeros((1, E), jnp.float32)
    p["sa_in_w"] = nrm(ks[2], (L, 3 * E, E))
    p["sa_in_b"] = nrm(ks[3], (L, 1, 3 * E))
    p["sa_out_w"] = nrm(ks[4], (L, E, E))
    p["sa_out_b"] = nrm(ks[5], (L, 1, E))
    p["ca_in_w"] = nrm(ks[6], (L, 3 * E, E))
    p["ca_in_b"] = nrm(ks[7], (L, 1, 3 * E))
    p["ca_out_w"] = nrm(ks[8], (L, E, E))
    p["ca_out_b"] = nrm(ks[9], (L, 1, E))
    p["n1_w"] = jnp.ones((L, 1, E), jnp.float32)
    p["n1_b"] = jnp.zeros((L, 1, E), jnp.float32)
    p["n2_w"] = jnp.ones((L, 1, E), jnp.float32)
    p["n2_b"] = jnp.zeros((L, 1, E), jnp.float32)
    p["n3_w"] = jnp.ones((L, 1, E), jnp.float32)
    p["n3_b"] = jnp.zeros((L, 1, E), jnp.float32)
    p["l1_w"] = nrm(ks[10], (L, Hid, E))
    p["l1_b"] = nrm(ks[11], (L, 1, Hid))
    p["l2_w"] = nrm(ks[12], (L, E, Hid))
    p["l2_b"] = nrm(ks[13], (L, 1, E))
    p["fc_w"] = nrm(ks[14], (V, E))
    p["fc_b"] = nrm(ks[15], (1, V))
    return p


# ----------------------------- plain-JAX f32 reference (sanity check) -----------------------------
def _forward_one(tokens, params):
    S = tokens.shape[0]
    x = params["tok_emb"][tokens] + params["pos_emb"][:S]
    x = _layernorm(x, params["ln0_w"], params["ln0_b"])
    ri = lax.broadcasted_iota(jnp.int32, (S, S), 0)
    ci = lax.broadcasted_iota(jnp.int32, (S, S), 1)
    causal = ci > ri
    memory = jnp.zeros((S, EMBED), jnp.float32)
    for l in range(NUM_LAYERS):
        a = _mha_ref(x, x, params["sa_in_w"][l], params["sa_in_b"][l],
                     params["sa_out_w"][l], params["sa_out_b"][l], causal)
        x = _layernorm(x + a, params["n1_w"][l], params["n1_b"][l])
        a = _mha_ref(x, memory, params["ca_in_w"][l], params["ca_in_b"][l],
                     params["ca_out_w"][l], params["ca_out_b"][l], None)
        x = _layernorm(x + a, params["n2_w"][l], params["n2_b"][l])
        h = jnp.maximum(_matmul_nt(x, params["l1_w"][l]) + params["l1_b"][l], 0.0)
        f = _matmul_nt(h, params["l2_w"][l]) + params["l2_b"][l]
        x = _layernorm(x + f, params["n3_w"][l], params["n3_b"][l])
    return _matmul_nt(x, params["fc_w"]) + params["fc_b"]


if __name__ == "__main__":
    key = jax.random.PRNGKey(0)
    k_ids, k_params = jax.random.split(key)
    params = init_params(k_params)

    B, S = 2, 8
    ids = jax.random.randint(k_ids, (B, S), 0, VOCAB, dtype=jnp.int32)

    out = gpt_forward(ids, params)
    out = jax.block_until_ready(out)

    ref = jax.vmap(_forward_one, in_axes=(0, None))(ids, params)
    # looser tolerance: kernel uses bf16 matmul operands (f32 accumulation)
    np.testing.assert_allclose(np.asarray(out), np.asarray(ref),
                               rtol=2e-2, atol=2e-2)
    assert out.shape == (B, S, VOCAB)
    print("KERNEL_OK")
</pallas_src>

<mosaic_0001>
module attributes {stable_mosaic.version = 11 : i64} {
  func.func @gpt_kernel(%arg0: i32, %arg1: memref<1x16x1xi32, #tpu.memory_space<vmem>>, %arg2: memref<1216x64xbf16, #tpu.memory_space<vmem>>, %arg3: memref<16x64xf32, #tpu.memory_space<vmem>>, %arg4: memref<32x32xf32, #tpu.memory_space<vmem>>, %arg5: memref<2x64xf32, #tpu.memory_space<vmem>>, %arg6: memref<2x9x64xf32, #tpu.memory_space<vmem>>, %arg7: memref<2x1x192xf32, #tpu.memory_space<vmem>>, %arg8: memref<2x1x128xf32, #tpu.memory_space<vmem>>, %arg9: memref<1x128xf32, #tpu.memory_space<vmem>>, %arg10: memref<16x128xf32, #tpu.memory_space<vmem>>) attributes {dimension_semantics = [#tpu.dimension_semantics<parallel>], iteration_bounds = array<i64: 1>, scalar_prefetch = 0 : i64, scratch_operands = 0 : i64, tpu.core_type = #tpu.core_type<tc>, window_params = [{transform_indices = @transform_0, window_bounds = array<i64: 1, 16, 1>}, {pipeline_mode = #tpu.pipeline_mode<synchronous>, transform_indices = @transform_1, window_bounds = array<i64: 1216, 64>}, {pipeline_mode = #tpu.pipeline_mode<synchronous>, transform_indices = @transform_2, window_bounds = array<i64: 16, 64>}, {pipeline_mode = #tpu.pipeline_mode<synchronous>, transform_indices = @transform_3, window_bounds = array<i64: 32, 32>}, {pipeline_mode = #tpu.pipeline_mode<synchronous>, transform_indices = @transform_4, window_bounds = array<i64: 2, 64>}, {pipeline_mode = #tpu.pipeline_mode<synchronous>, transform_indices = @transform_5, window_bounds = array<i64: 2, 9, 64>}, {pipeline_mode = #tpu.pipeline_mode<synchronous>, transform_indices = @transform_6, window_bounds = array<i64: 2, 1, 192>}, {pipeline_mode = #tpu.pipeline_mode<synchronous>, transform_indices = @transform_7, window_bounds = array<i64: 2, 1, 128>}, {pipeline_mode = #tpu.pipeline_mode<synchronous>, transform_indices = @transform_8, window_bounds = array<i64: 1, 128>}, {transform_indices = @transform_9, window_bounds = array<i64: 16, 128>}]} {
    %c0 = arith.constant 0 : index
    %c0_0 = arith.constant 0 : index
    %c0_1 = arith.constant 0 : index
    %0 = vector.load %arg1[%c0, %c0_0, %c0_1] : memref<1x16x1xi32, #tpu.memory_space<vmem>>, vector<1x16x1xi32>
    %1 = vector.shape_cast %0 : vector<1x16x1xi32> to vector<16x1xi32>
    %2 = tpu.iota {dimensions = array<i32: 1>} : vector<16x64xi32>
    %3 = vector.broadcast %1 : vector<16x1xi32> to vector<16x64xi32>
    %4 = arith.cmpi eq, %2, %3 : vector<16x64xi32>
    %5 = arith.extui %4 : vector<16x64xi1> to vector<16x64xi32>
    %6 = arith.sitofp %5 : vector<16x64xi32> to vector<16x64xf32>
    %7 = arith.truncf %6 : vector<16x64xf32> to vector<16x64xbf16>
    %c0_2 = arith.constant 0 : index
    %c0_3 = arith.constant 0 : index
    %8 = vector.load %arg2[%c0_2, %c0_3] : memref<1216x64xbf16, #tpu.memory_space<vmem>>, vector<64x64xbf16>
    %cst = arith.constant dense<0.000000e+00> : vector<16x64xf32>
    %9 = tpu.matmul %7, %8, %cst {dimension_numbers = #tpu.dot_dimension_numbers<[1], [0], [0], [1], [0, 0, 1, 1], [], []>} : vector<16x64xbf16>, vector<64x64xbf16>, vector<16x64xf32> -> vector<16x64xf32>
    %c0_4 = arith.constant 0 : index
    %c0_5 = arith.constant 0 : index
    %10 = vector.load %arg3[%c0_4, %c0_5] : memref<16x64xf32, #tpu.memory_space<vmem>>, vector<16x64xf32>
    %11 = arith.addf %9, %10 : vector<16x64xf32>
    %c0_6 = arith.constant 0 : index
    %c0_7 = arith.constant 0 : index
    %12 = vector.load %arg5[%c0_6, %c0_7] : memref<2x64xf32, #tpu.memory_space<vmem>>, vector<1x64xf32>
    %c1 = arith.constant 1 : index
    %c0_8 = arith.constant 0 : index
    %13 = vector.load %arg5[%c1, %c0_8] : memref<2x64xf32, #tpu.memory_space<vmem>>, vector<1x64xf32>
    %cst_9 = arith.constant dense<0.000000e+00> : vector<16xf32>
    %14 = vector.multi_reduction <add>, %11, %cst_9 [1] : vector<16x64xf32> to vector<16xf32>
    %15 = vector.shape_cast %14 : vector<16xf32> to vector<16x1xf32>
    %cst_10 = arith.constant 6.400000e+01 : f32
    %16 = vector.broadcast %cst_10 : f32 to vector<16x1xf32>
    %17 = arith.divf %15, %16 : vector<16x1xf32>
    %18 = vector.broadcast %17 : vector<16x1xf32> to vector<16x64xf32>
    %19 = arith.subf %11, %18 : vector<16x64xf32>
    %20 = arith.mulf %19, %19 : vector<16x64xf32>
    %cst_11 = arith.constant dense<0.000000e+00> : vector<16xf32>
    %21 = vector.multi_reduction <add>, %20, %cst_11 [1] : vector<16x64xf32> to vector<16xf32>
    %22 = vector.shape_cast %21 : vector<16xf32> to vector<16x1xf32>
    %cst_12 = arith.constant 6.400000e+01 : f32
    %23 = vector.broadcast %cst_12 : f32 to vector<16x1xf32>
    %24 = arith.divf %22, %23 : vector<16x1xf32>
    %25 = vector.broadcast %17 : vector<16x1xf32> to vector<16x64xf32>
    %26 = arith.subf %11, %25 : vector<16x64xf32>
    %cst_13 = arith.constant 9.99999974E-6 : f32
    %27 = vector.broadcast %cst_13 : f32 to vector<16x1xf32>
    %28 = arith.addf %24, %27 : vector<16x1xf32>
    %29 = math.rsqrt %28 : vector<16x1xf32>
    %30 = vector.broadcast %29 : vector<16x1xf32> to vector<16x64xf32>
    %31 = arith.mulf %26, %30 : vector<16x64xf32>
    %32 = vector.broadcast %12 : vector<1x64xf32> to vector<16x64xf32>
    %33 = arith.mulf %31, %32 : vector<16x64xf32>
    %34 = vector.broadcast %13 : vector<1x64xf32> to vector<16x64xf32>
    %35 = arith.addf %33, %34 : vector<16x64xf32>
    %c0_14 = arith.constant 0 : index
    %c0_15 = arith.constant 0 : index
    %36 = vector.load %arg4[%c0_14, %c0_15] : memref<32x32xf32, #tpu.memory_space<vmem>>, vector<32x32xf32>
    %c64 = arith.constant 64 : index
    %c0_16 = arith.constant 0 : index
    %37 = vector.load %arg2[%c64, %c0_16] : memref<1216x64xbf16, #tpu.memory_space<vmem>>, vector<192x64xbf16>
    %c256 = arith.constant 256 : index
    %c0_17 = arith.constant 0 : index
    %38 = vector.load %arg2[%c256, %c0_17] : memref<1216x64xbf16, #tpu.memory_space<vmem>>, vector<64x64xbf16>
    %c320 = arith.constant 320 : index
    %c0_18 = arith.constant 0 : index
    %39 = vector.load %arg2[%c320, %c0_18] : memref<1216x64xbf16, #tpu.memory_space<vmem>>, vector<128x64xbf16>
    %c448 = arith.constant 448 : index
    %c0_19 = arith.constant 0 : index
    %40 = vector.load %arg2[%c448, %c0_19] : memref<1216x64xbf16, #tpu.memory_space<vmem>>, vector<128x64xbf16>
    %c0_20 = arith.constant 0 : index
    %c0_21 = arith.constant 0 : index
    %c0_22 = arith.constant 0 : index
    %41 = vector.load %arg6[%c0_20, %c0_21, %c0_22] : memref<2x9x64xf32, #tpu.memory_space<vmem>>, vector<1x9x64xf32>
    %42 = vector.shape_cast %41 : vector<1x9x64xf32> to vector<9x64xf32>
    %43 = arith.truncf %35 : vector<16x64xf32> to vector<16x64xbf16>
    %cst_23 = arith.constant dense<0.000000e+00> : vector<16x192xf32>
    %44 = tpu.matmul %43, %37, %cst_23 {dimension_numbers = #tpu.dot_dimension_numbers<[1], [1], [0], [0], [0, 0, 1, 0], [], []>} : vector<16x64xbf16>, vector<192x64xbf16>, vector<16x192xf32> -> vector<16x192xf32>
    %c0_24 = arith.constant 0 : index
    %c0_25 = arith.constant 0 : index
    %c0_26 = arith.constant 0 : index
    %45 = vector.load %arg7[%c0_24, %c0_25, %c0_26] : memref<2x1x192xf32, #tpu.memory_space<vmem>>, vector<1x1x192xf32>
    %46 = vector.shape_cast %45 : vector<1x1x192xf32> to vector<1x192xf32>
    %47 = vector.broadcast %46 : vector<1x192xf32> to vector<16x192xf32>
    %48 = arith.addf %44, %47 : vector<16x192xf32>
    %49 = arith.truncf %48 : vector<16x192xf32> to vector<16x192xbf16>
    %50 = vector.extract_strided_slice %49 {offsets = [0, 0], sizes = [16, 32], strides = [1, 1]} : vector<16x192xbf16> to vector<16x32xbf16>
    %51 = vector.extract_strided_slice %49 {offsets = [0, 32], sizes = [16, 32], strides = [1, 1]} : vector<16x192xbf16> to vector<16x32xbf16>
    %52 = tpu.concatenate %50, %51 in 0 : vector<16x32xbf16>, vector<16x32xbf16> -> vector<32x32xbf16>
    %53 = vector.extract_strided_slice %49 {offsets = [0, 64], sizes = [16, 32], strides = [1, 1]} : vector<16x192xbf16> to vector<16x32xbf16>
    %54 = vector.extract_strided_slice %49 {offsets = [0, 96], sizes = [16, 32], strides = [1, 1]} : vector<16x192xbf16> to vector<16x32xbf16>
    %55 = tpu.concatenate %53, %54 in 0 : vector<16x32xbf16>, vector<16x32xbf16> -> vector<32x32xbf16>
    %56 = vector.extract_strided_slice %49 {offsets = [0, 128], sizes = [16, 32], strides = [1, 1]} : vector<16x192xbf16> to vector<16x32xbf16>
    %57 = vector.extract_strided_slice %49 {offsets = [0, 160], sizes = [16, 32], strides = [1, 1]} : vector<16x192xbf16> to vector<16x32xbf16>
    %58 = tpu.concatenate %56, %57 in 0 : vector<16x32xbf16>, vector<16x32xbf16> -> vector<32x32xbf16>
    %cst_27 = arith.constant dense<0.000000e+00> : vector<32x32xf32>
    %59 = tpu.matmul %52, %55, %cst_27 {dimension_numbers = #tpu.dot_dimension_numbers<[1], [1], [0], [0], [0, 0, 1, 0], [], []>} : vector<32x32xbf16>, vector<32x32xbf16>, vector<32x32xf32> -> vector<32x32xf32>
    %60 = arith.addf %59, %36 : vector<32x32xf32>
    %cst_28 = arith.constant dense<0xFF800000> : vector<32xf32>
    %61 = vector.multi_reduction <maximumf>, %60, %cst_28 [1] : vector<32x32xf32> to vector<32xf32>
    %62 = vector.shape_cast %61 : vector<32xf32> to vector<32x1xf32>
    %63 = vector.broadcast %62 : vector<32x1xf32> to vector<32x32xf32>
    %64 = arith.subf %60, %63 : vector<32x32xf32>
    %65 = math.exp %64 : vector<32x32xf32>
    %cst_29 = arith.constant dense<0.000000e+00> : vector<32xf32>
    %66 = vector.multi_reduction <add>, %65, %cst_29 [1] : vector<32x32xf32> to vector<32xf32>
    %67 = vector.shape_cast %66 : vector<32xf32> to vector<32x1xf32>
    %68 = tpu.reciprocal %67 {approx = true} : vector<32x1xf32> -> vector<32x1xf32>
    %69 = vector.broadcast %68 : vector<32x1xf32> to vector<32x32xf32>
    %70 = arith.mulf %65, %69 : vector<32x32xf32>
    %71 = arith.truncf %70 : vector<32x32xf32> to vector<32x32xbf16>
    %cst_30 = arith.constant dense<0.000000e+00> : vector<32x32xf32>
    %72 = tpu.matmul %71, %58, %cst_30 {dimension_numbers = #tpu.dot_dimension_numbers<[1], [0], [0], [1], [0, 0, 1, 1], [], []>} : vector<32x32xbf16>, vector<32x32xbf16>, vector<32x32xf32> -> vector<32x32xf32>
    %73 = vector.extract_strided_slice %72 {offsets = [0, 0], sizes = [16, 32], strides = [1, 1]} : vector<32x32xf32> to vector<16x32xf32>
    %74 = vector.extract_strided_slice %72 {offsets = [16, 0], sizes = [16, 32], strides = [1, 1]} : vector<32x32xf32> to vector<16x32xf32>
    %75 = tpu.concatenate %73, %74 in 1 : vector<16x32xf32>, vector<16x32xf32> -> vector<16x64xf32>
    %76 = arith.truncf %75 : vector<16x64xf32> to vector<16x64xbf16>
    %cst_31 = arith.constant dense<0.000000e+00> : vector<16x64xf32>
    %77 = tpu.matmul %76, %38, %cst_31 {dimension_numbers = #tpu.dot_dimension_numbers<[1], [1], [0], [0], [0, 0, 1, 0], [], []>} : vector<16x64xbf16>, vector<64x64xbf16>, vector<16x64xf32> -> vector<16x64xf32>
    %78 = vector.extract_strided_slice %42 {offsets = [0, 0], sizes = [1, 64], strides = [1, 1]} : vector<9x64xf32> to vector<1x64xf32>
    %79 = vector.broadcast %78 : vector<1x64xf32> to vector<16x64xf32>
    %80 = arith.addf %77, %79 : vector<16x64xf32>
    %81 = arith.addf %35, %80 : vector<16x64xf32>
    %82 = vector.extract_strided_slice %42 {offsets = [2, 0], sizes = [1, 64], strides = [1, 1]} : vector<9x64xf32> to vector<1x64xf32>
    %83 = vector.extract_strided_slice %42 {offsets = [3, 0], sizes = [1, 64], strides = [1, 1]} : vector<9x64xf32> to vector<1x64xf32>
    %cst_32 = arith.constant dense<0.000000e+00> : vector<16xf32>
    %84 = vector.multi_reduction <add>, %81, %cst_32 [1] : vector<16x64xf32> to vector<16xf32>
    %85 = vector.shape_cast %84 : vector<16xf32> to vector<16x1xf32>
    %cst_33 = arith.constant 6.400000e+01 : f32
    %86 = vector.broadcast %cst_33 : f32 to vector<16x1xf32>
    %87 = arith.divf %85, %86 : vector<16x1xf32>
    %88 = vector.broadcast %87 : vector<16x1xf32> to vector<16x64xf32>
    %89 = arith.subf %81, %88 : vector<16x64xf32>
    %90 = arith.mulf %89, %89 : vector<16x64xf32>
    %cst_34 = arith.constant dense<0.000000e+00> : vector<16xf32>
    %91 = vector.multi_reduction <add>, %90, %cst_34 [1] : vector<16x64xf32> to vector<16xf32>
    %92 = vector.shape_cast %91 : vector<16xf32> to vector<16x1xf32>
    %cst_35 = arith.constant 6.400000e+01 : f32
    %93 = vector.broadcast %cst_35 : f32 to vector<16x1xf32>
    %94 = arith.divf %92, %93 : vector<16x1xf32>
    %95 = vector.broadcast %87 : vector<16x1xf32> to vector<16x64xf32>
    %96 = arith.subf %81, %95 : vector<16x64xf32>
    %cst_36 = arith.constant 9.99999974E-6 : f32
    %97 = vector.broadcast %cst_36 : f32 to vector<16x1xf32>
    %98 = arith.addf %94, %97 : vector<16x1xf32>
    %99 = math.rsqrt %98 : vector<16x1xf32>
    %100 = vector.broadcast %99 : vector<16x1xf32> to vector<16x64xf32>
    %101 = arith.mulf %96, %100 : vector<16x64xf32>
    %102 = vector.broadcast %82 : vector<1x64xf32> to vector<16x64xf32>
    %103 = arith.mulf %101, %102 : vector<16x64xf32>
    %104 = vector.broadcast %83 : vector<1x64xf32> to vector<16x64xf32>
    %105 = arith.addf %103, %104 : vector<16x64xf32>
    %106 = vector.extract_strided_slice %42 {offsets = [1, 0], sizes = [1, 64], strides = [1, 1]} : vector<9x64xf32> to vector<1x64xf32>
    %107 = vector.broadcast %106 : vector<1x64xf32> to vector<16x64xf32>
    %108 = arith.addf %105, %107 : vector<16x64xf32>
    %109 = vector.extract_strided_slice %42 {offsets = [4, 0], sizes = [1, 64], strides = [1, 1]} : vector<9x64xf32> to vector<1x64xf32>
    %110 = vector.extract_strided_slice %42 {offsets = [5, 0], sizes = [1, 64], strides = [1, 1]} : vector<9x64xf32> to vector<1x64xf32>
    %cst_37 = arith.constant dense<0.000000e+00> : vector<16xf32>
    %111 = vector.multi_reduction <add>, %108, %cst_37 [1] : vector<16x64xf32> to vector<16xf32>
    %112 = vector.shape_cast %111 : vector<16xf32> to vector<16x1xf32>
    %cst_38 = arith.constant 6.400000e+01 : f32
    %113 = vector.broadcast %cst_38 : f32 to vector<16x1xf32>
    %114 = arith.divf %112, %113 : vector<16x1xf32>
    %115 = vector.broadcast %114 : vector<16x1xf32> to vector<16x64xf32>
    %116 = arith.subf %108, %115 : vector<16x64xf32>
    %117 = arith.mulf %116, %116 : vector<16x64xf32>
    %cst_39 = arith.constant dense<0.000000e+00> : vector<16xf32>
    %118 = vector.multi_reduction <add>, %117, %cst_39 [1] : vector<16x64xf32> to vector<16xf32>
    %119 = vector.shape_cast %118 : vector<16xf32> to vector<16x1xf32>
    %cst_40 = arith.constant 6.400000e+01 : f32
    %120 = vector.broadcast %cst_40 : f32 to vector<16x1xf32>
    %121 = arith.divf %119, %120 : vector<16x1xf32>
    %122 = vector.broadcast %114 : vector<16x1xf32> to vector<16x64xf32>
    %123 = arith.subf %108, %122 : vector<16x64xf32>
    %cst_41 = arith.constant 9.99999974E-6 : f32
    %124 = vector.broadcast %cst_41 : f32 to vector<16x1xf32>
    %125 = arith.addf %121, %124 : vector<16x1xf32>
    %126 = math.rsqrt %125 : vector<16x1xf32>
    %127 = vector.broadcast %126 : vector<16x1xf32> to vector<16x64xf32>
    %128 = arith.mulf %123, %127 : vector<16x64xf32>
    %129 = vector.broadcast %109 : vector<1x64xf32> to vector<16x64xf32>
    %130 = arith.mulf %128, %129 : vector<16x64xf32>
    %131 = vector.broadcast %110 : vector<1x64xf32> to vector<16x64xf32>
    %132 = arith.addf %130, %131 : vector<16x64xf32>
    %133 = arith.truncf %132 : vector<16x64xf32> to vector<16x64xbf16>
    %cst_42 = arith.constant dense<0.000000e+00> : vector<16x128xf32>
    %134 = tpu.matmul %133, %39, %cst_42 {dimension_numbers = #tpu.dot_dimension_numbers<[1], [1], [0], [0], [0, 0, 1, 0], [], []>} : vector<16x64xbf16>, vector<128x64xbf16>, vector<16x128xf32> -> vector<16x128xf32>
    %c0_43 = arith.constant 0 : index
    %c0_44 = arith.constant 0 : index
    %c0_45 = arith.constant 0 : index
    %135 = vector.load %arg8[%c0_43, %c0_44, %c0_45] : memref<2x1x128xf32, #tpu.memory_space<vmem>>, vector<1x1x128xf32>
    %136 = vector.shape_cast %135 : vector<1x1x128xf32> to vector<1x128xf32>
    %137 = vector.broadcast %136 : vector<1x128xf32> to vector<16x128xf32>
    %138 = arith.addf %134, %137 : vector<16x128xf32>
    %cst_46 = arith.constant 0.000000e+00 : f32
    %139 = vector.broadcast %cst_46 : f32 to vector<16x128xf32>
    %140 = arith.maximumf %138, %139 : vector<16x128xf32>
    %141 = arith.truncf %140 : vector<16x128xf32> to vector<16x128xbf16>
    %cst_47 = arith.constant dense<0.000000e+00> : vector<16x64xf32>
    %142 = tpu.matmul %141, %40, %cst_47 {dimension_numbers = #tpu.dot_dimension_numbers<[1], [0], [0], [1], [0, 0, 1, 1], [], []>} : vector<16x128xbf16>, vector<128x64xbf16>, vector<16x64xf32> -> vector<16x64xf32>
    %143 = vector.extract_strided_slice %42 {offsets = [8, 0], sizes = [1, 64], strides = [1, 1]} : vector<9x64xf32> to vector<1x64xf32>
    %144 = vector.broadcast %143 : vector<1x64xf32> to vector<16x64xf32>
    %145 = arith.addf %142, %144 : vector<16x64xf32>
    %146 = arith.addf %132, %145 : vector<16x64xf32>
    %147 = vector.extract_strided_slice %42 {offsets = [6, 0], sizes = [1, 64], strides = [1, 1]} : vector<9x64xf32> to vector<1x64xf32>
    %148 = vector.extract_strided_slice %42 {offsets = [7, 0], sizes = [1, 64], strides = [1, 1]} : vector<9x64xf32> to vector<1x64xf32>
    %cst_48 = arith.constant dense<0.000000e+00> : vector<16xf32>
    %149 = vector.multi_reduction <add>, %146, %cst_48 [1] : vector<16x64xf32> to vector<16xf32>
    %150 = vector.shape_cast %149 : vector<16xf32> to vector<16x1xf32>
    %cst_49 = arith.constant 6.400000e+01 : f32
    %151 = vector.broadcast %cst_49 : f32 to vector<16x1xf32>
    %152 = arith.divf %150, %151 : vector<16x1xf32>
    %153 = vector.broadcast %152 : vector<16x1xf32> to vector<16x64xf32>
    %154 = arith.subf %146, %153 : vector<16x64xf32>
    %155 = arith.mulf %154, %154 : vector<16x64xf32>
    %cst_50 = arith.constant dense<0.000000e+00> : vector<16xf32>
    %156 = vector.multi_reduction <add>, %155, %cst_50 [1] : vector<16x64xf32> to vector<16xf32>
    %157 = vector.shape_cast %156 : vector<16xf32> to vector<16x1xf32>
    %cst_51 = arith.constant 6.400000e+01 : f32
    %158 = vector.broadcast %cst_51 : f32 to vector<16x1xf32>
    %159 = arith.divf %157, %158 : vector<16x1xf32>
    %160 = vector.broadcast %152 : vector<16x1xf32> to vector<16x64xf32>
    %161 = arith.subf %146, %160 : vector<16x64xf32>
    %cst_52 = arith.constant 9.99999974E-6 : f32
    %162 = vector.broadcast %cst_52 : f32 to vector<16x1xf32>
    %163 = arith.addf %159, %162 : vector<16x1xf32>
    %164 = math.rsqrt %163 : vector<16x1xf32>
    %165 = vector.broadcast %164 : vector<16x1xf32> to vector<16x64xf32>
    %166 = arith.mulf %161, %165 : vector<16x64xf32>
    %167 = vector.broadcast %147 : vector<1x64xf32> to vector<16x64xf32>
    %168 = arith.mulf %166, %167 : vector<16x64xf32>
    %169 = vector.broadcast %148 : vector<1x64xf32> to vector<16x64xf32>
    %170 = arith.addf %168, %169 : vector<16x64xf32>
    %c576 = arith.constant 576 : index
    %c0_53 = arith.constant 0 : index
    %171 = vector.load %arg2[%c576, %c0_53] : memref<1216x64xbf16, #tpu.memory_space<vmem>>, vector<192x64xbf16>
    %c768 = arith.constant 768 : index
    %c0_54 = arith.constant 0 : index
    %172 = vector.load %arg2[%c768, %c0_54] : memref<1216x64xbf16, #tpu.memory_space<vmem>>, vector<64x64xbf16>
    %c832 = arith.constant 832 : index
    %c0_55 = arith.constant 0 : index
    %173 = vector.load %arg2[%c832, %c0_55] : memref<1216x64xbf16, #tpu.memory_space<vmem>>, vector<128x64xbf16>
    %c960 = arith.constant 960 : index
    %c0_56 = arith.constant 0 : index
    %174 = vector.load %arg2[%c960, %c0_56] : memref<1216x64xbf16, #tpu.memory_space<vmem>>, vector<128x64xbf16>
    %c1_57 = arith.constant 1 : index
    %c0_58 = arith.constant 0 : index
    %c0_59 = arith.constant 0 : index
    %175 = vector.load %arg6[%c1_57, %c0_58, %c0_59] : memref<2x9x64xf32, #tpu.memory_space<vmem>>, vector<1x9x64xf32>
    %176 = vector.shape_cast %175 : vector<1x9x64xf32> to vector<9x64xf32>
    %177 = arith.truncf %170 : vector<16x64xf32> to vector<16x64xbf16>
    %cst_60 = arith.constant dense<0.000000e+00> : vector<16x192xf32>
    %178 = tpu.matmul %177, %171, %cst_60 {dimension_numbers = #tpu.dot_dimension_numbers<[1], [1], [0], [0], [0, 0, 1, 0], [], []>} : vector<16x64xbf16>, vector<192x64xbf16>, vector<16x192xf32> -> vector<16x192xf32>
    %c1_61 = arith.constant 1 : index
    %c0_62 = arith.constant 0 : index
    %c0_63 = arith.constant 0 : index
    %179 = vector.load %arg7[%c1_61, %c0_62, %c0_63] : memref<2x1x192xf32, #tpu.memory_space<vmem>>, vector<1x1x192xf32>
    %180 = vector.shape_cast %179 : vector<1x1x192xf32> to vector<1x192xf32>
    %181 = vector.broadcast %180 : vector<1x192xf32> to vector<16x192xf32>
    %182 = arith.addf %178, %181 : vector<16x192xf32>
    %183 = arith.truncf %182 : vector<16x192xf32> to vector<16x192xbf16>
    %184 = vector.extract_strided_slice %183 {offsets = [0, 0], sizes = [16, 32], strides = [1, 1]} : vector<16x192xbf16> to vector<16x32xbf16>
    %185 = vector.extract_strided_slice %183 {offsets = [0, 32], sizes = [16, 32], strides = [1, 1]} : vector<16x192xbf16> to vector<16x32xbf16>
    %186 = tpu.concatenate %184, %185 in 0 : vector<16x32xbf16>, vector<16x32xbf16> -> vector<32x32xbf16>
    %187 = vector.extract_strided_slice %183 {offsets = [0, 64], sizes = [16, 32], strides = [1, 1]} : vector<16x192xbf16> to vector<16x32xbf16>
    %188 = vector.extract_strided_slice %183 {offsets = [0, 96], sizes = [16, 32], strides = [1, 1]} : vector<16x192xbf16> to vector<16x32xbf16>
    %189 = tpu.concatenate %187, %188 in 0 : vector<16x32xbf16>, vector<16x32xbf16> -> vector<32x32xbf16>
    %190 = vector.extract_strided_slice %183 {offsets = [0, 128], sizes = [16, 32], strides = [1, 1]} : vector<16x192xbf16> to vector<16x32xbf16>
    %191 = vector.extract_strided_slice %183 {offsets = [0, 160], sizes = [16, 32], strides = [1, 1]} : vector<16x192xbf16> to vector<16x32xbf16>
    %192 = tpu.concatenate %190, %191 in 0 : vector<16x32xbf16>, vector<16x32xbf16> -> vector<32x32xbf16>
    %cst_64 = arith.constant dense<0.000000e+00> : vector<32x32xf32>
    %193 = tpu.matmul %186, %189, %cst_64 {dimension_numbers = #tpu.dot_dimension_numbers<[1], [1], [0], [0], [0, 0, 1, 0], [], []>} : vector<32x32xbf16>, vector<32x32xbf16>, vector<32x32xf32> -> vector<32x32xf32>
    %194 = arith.addf %193, %36 : vector<32x32xf32>
    %cst_65 = arith.constant dense<0xFF800000> : vector<32xf32>
    %195 = vector.multi_reduction <maximumf>, %194, %cst_65 [1] : vector<32x32xf32> to vector<32xf32>
    %196 = vector.shape_cast %195 : vector<32xf32> to vector<32x1xf32>
    %197 = vector.broadcast %196 : vector<32x1xf32> to vector<32x32xf32>
    %198 = arith.subf %194, %197 : vector<32x32xf32>
    %199 = math.exp %198 : vector<32x32xf32>
    %cst_66 = arith.constant dense<0.000000e+00> : vector<32xf32>
    %200 = vector.multi_reduction <add>, %199, %cst_66 [1] : vector<32x32xf32> to vector<32xf32>
    %201 = vector.shape_cast %200 : vector<32xf32> to vector<32x1xf32>
    %202 = tpu.reciprocal %201 {approx = true} : vector<32x1xf32> -> vector<32x1xf32>
    %203 = vector.broadcast %202 : vector<32x1xf32> to vector<32x32xf32>
    %204 = arith.mulf %199, %203 : vector<32x32xf32>
    %205 = arith.truncf %204 : vector<32x32xf32> to vector<32x32xbf16>
    %cst_67 = arith.constant dense<0.000000e+00> : vector<32x32xf32>
    %206 = tpu.matmul %205, %192, %cst_67 {dimension_numbers = #tpu.dot_dimension_numbers<[1], [0], [0], [1], [0, 0, 1, 1], [], []>} : vector<32x32xbf16>, vector<32x32xbf16>, vector<32x32xf32> -> vector<32x32xf32>
    %207 = vector.extract_strided_slice %206 {offsets = [0, 0], sizes = [16, 32], strides = [1, 1]} : vector<32x32xf32> to vector<16x32xf32>
    %208 = vector.extract_strided_slice %206 {offsets = [16, 0], sizes = [16, 32], strides = [1, 1]} : vector<32x32xf32> to vector<16x32xf32>
    %209 = tpu.concatenate %207, %208 in 1 : vector<16x32xf32>, vector<16x32xf32> -> vector<16x64xf32>
    %210 = arith.truncf %209 : vector<16x64xf32> to vector<16x64xbf16>
    %cst_68 = arith.constant dense<0.000000e+00> : vector<16x64xf32>
    %211 = tpu.matmul %210, %172, %cst_68 {dimension_numbers = #tpu.dot_dimension_numbers<[1], [1], [0], [0], [0, 0, 1, 0], [], []>} : vector<16x64xbf16>, vector<64x64xbf16>, vector<16x64xf32> -> vector<16x64xf32>
    %212 = vector.extract_strided_slice %176 {offsets = [0, 0], sizes = [1, 64], strides = [1, 1]} : vector<9x64xf32> to vector<1x64xf32>
    %213 = vector.broadcast %212 : vector<1x64xf32> to vector<16x64xf32>
    %214 = arith.addf %211, %213 : vector<16x64xf32>
    %215 = arith.addf %170, %214 : vector<16x64xf32>
    %216 = vector.extract_strided_slice %176 {offsets = [2, 0], sizes = [1, 64], strides = [1, 1]} : vector<9x64xf32> to vector<1x64xf32>
    %217 = vector.extract_strided_slice %176 {offsets = [3, 0], sizes = [1, 64], strides = [1, 1]} : vector<9x64xf32> to vector<1x64xf32>
    %cst_69 = arith.constant dense<0.000000e+00> : vector<16xf32>
    %218 = vector.multi_reduction <add>, %215, %cst_69 [1] : vector<16x64xf32> to vector<16xf32>
    %219 = vector.shape_cast %218 : vector<16xf32> to vector<16x1xf32>
    %cst_70 = arith.constant 6.400000e+01 : f32
    %220 = vector.broadcast %cst_70 : f32 to vector<16x1xf32>
    %221 = arith.divf %219, %220 : vector<16x1xf32>
    %222 = vector.broadcast %221 : vector<16x1xf32> to vector<16x64xf32>
    %223 = arith.subf %215, %222 : vector<16x64xf32>
    %224 = arith.mulf %223, %223 : vector<16x64xf32>
    %cst_71 = arith.constant dense<0.000000e+00> : vector<16xf32>
    %225 = vector.multi_reduction <add>, %224, %cst_71 [1] : vector<16x64xf32> to vector<16xf32>
    %226 = vector.shape_cast %225 : vector<16xf32> to vector<16x1xf32>
    %cst_72 = arith.constant 6.400000e+01 : f32
    %227 = vector.broadcast %cst_72 : f32 to vector<16x1xf32>
    %228 = arith.divf %226, %227 : vector<16x1xf32>
    %229 = vector.broadcast %221 : vector<16x1xf32> to vector<16x64xf32>
    %230 = arith.subf %215, %229 : vector<16x64xf32>
    %cst_73 = arith.constant 9.99999974E-6 : f32
    %231 = vector.broadcast %cst_73 : f32 to vector<16x1xf32>
    %232 = arith.addf %228, %231 : vector<16x1xf32>
    %233 = math.rsqrt %232 : vector<16x1xf32>
    %234 = vector.broadcast %233 : vector<16x1xf32> to vector<16x64xf32>
    %235 = arith.mulf %230, %234 : vector<16x64xf32>
    %236 = vector.broadcast %216 : vector<1x64xf32> to vector<16x64xf32>
    %237 = arith.mulf %235, %236 : vector<16x64xf32>
    %238 = vector.broadcast %217 : vector<1x64xf32> to vector<16x64xf32>
    %239 = arith.addf %237, %238 : vector<16x64xf32>
    %240 = vector.extract_strided_slice %176 {offsets = [1, 0], sizes = [1, 64], strides = [1, 1]} : vector<9x64xf32> to vector<1x64xf32>
    %241 = vector.broadcast %240 : vector<1x64xf32> to vector<16x64xf32>
    %242 = arith.addf %239, %241 : vector<16x64xf32>
    %243 = vector.extract_strided_slice %176 {offsets = [4, 0], sizes = [1, 64], strides = [1, 1]} : vector<9x64xf32> to vector<1x64xf32>
    %244 = vector.extract_strided_slice %176 {offsets = [5, 0], sizes = [1, 64], strides = [1, 1]} : vector<9x64xf32> to vector<1x64xf32>
    %cst_74 = arith.constant dense<0.000000e+00> : vector<16xf32>
    %245 = vector.multi_reduction <add>, %242, %cst_74 [1] : vector<16x64xf32> to vector<16xf32>
    %246 = vector.shape_cast %245 : vector<16xf32> to vector<16x1xf32>
    %cst_75 = arith.constant 6.400000e+01 : f32
    %247 = vector.broadcast %cst_75 : f32 to vector<16x1xf32>
    %248 = arith.divf %246, %247 : vector<16x1xf32>
    %249 = vector.broadcast %248 : vector<16x1xf32> to vector<16x64xf32>
    %250 = arith.subf %242, %249 : vector<16x64xf32>
    %251 = arith.mulf %250, %250 : vector<16x64xf32>
    %cst_76 = arith.constant dense<0.000000e+00> : vector<16xf32>
    %252 = vector.multi_reduction <add>, %251, %cst_76 [1] : vector<16x64xf32> to vector<16xf32>
    %253 = vector.shape_cast %252 : vector<16xf32> to vector<16x1xf32>
    %cst_77 = arith.constant 6.400000e+01 : f32
    %254 = vector.broadcast %cst_77 : f32 to vector<16x1xf32>
    %255 = arith.divf %253, %254 : vector<16x1xf32>
    %256 = vector.broadcast %248 : vector<16x1xf32> to vector<16x64xf32>
    %257 = arith.subf %242, %256 : vector<16x64xf32>
    %cst_78 = arith.constant 9.99999974E-6 : f32
    %258 = vector.broadcast %cst_78 : f32 to vector<16x1xf32>
    %259 = arith.addf %255, %258 : vector<16x1xf32>
    %260 = math.rsqrt %259 : vector<16x1xf32>
    %261 = vector.broadcast %260 : vector<16x1xf32> to vector<16x64xf32>
    %262 = arith.mulf %257, %261 : vector<16x64xf32>
    %263 = vector.broadcast %243 : vector<1x64xf32> to vector<16x64xf32>
    %264 = arith.mulf %262, %263 : vector<16x64xf32>
    %265 = vector.broadcast %244 : vector<1x64xf32> to vector<16x64xf32>
    %266 = arith.addf %264, %265 : vector<16x64xf32>
    %267 = arith.truncf %266 : vector<16x64xf32> to vector<16x64xbf16>
    %cst_79 = arith.constant dense<0.000000e+00> : vector<16x128xf32>
    %268 = tpu.matmul %267, %173, %cst_79 {dimension_numbers = #tpu.dot_dimension_numbers<[1], [1], [0], [0], [0, 0, 1, 0], [], []>} : vector<16x64xbf16>, vector<128x64xbf16>, vector<16x128xf32> -> vector<16x128xf32>
    %c1_80 = arith.constant 1 : index
    %c0_81 = arith.constant 0 : index
    %c0_82 = arith.constant 0 : index
    %269 = vector.load %arg8[%c1_80, %c0_81, %c0_82] : memref<2x1x128xf32, #tpu.memory_space<vmem>>, vector<1x1x128xf32>
    %270 = vector.shape_cast %269 : vector<1x1x128xf32> to vector<1x128xf32>
    %271 = vector.broadcast %270 : vector<1x128xf32> to vector<16x128xf32>
    %272 = arith.addf %268, %271 : vector<16x128xf32>
    %cst_83 = arith.constant 0.000000e+00 : f32
    %273 = vector.broadcast %cst_83 : f32 to vector<16x128xf32>
    %274 = arith.maximumf %272, %273 : vector<16x128xf32>
    %275 = arith.truncf %274 : vector<16x128xf32> to vector<16x128xbf16>
    %cst_84 = arith.constant dense<0.000000e+00> : vector<16x64xf32>
    %276 = tpu.matmul %275, %174, %cst_84 {dimension_numbers = #tpu.dot_dimension_numbers<[1], [0], [0], [1], [0, 0, 1, 1], [], []>} : vector<16x128xbf16>, vector<128x64xbf16>, vector<16x64xf32> -> vector<16x64xf32>
    %277 = vector.extract_strided_slice %176 {offsets = [8, 0], sizes = [1, 64], strides = [1, 1]} : vector<9x64xf32> to vector<1x64xf32>
    %278 = vector.broadcast %277 : vector<1x64xf32> to vector<16x64xf32>
    %279 = arith.addf %276, %278 : vector<16x64xf32>
    %280 = arith.addf %266, %279 : vector<16x64xf32>
    %281 = vector.extract_strided_slice %176 {offsets = [6, 0], sizes = [1, 64], strides = [1, 1]} : vector<9x64xf32> to vector<1x64xf32>
    %282 = vector.extract_strided_slice %176 {offsets = [7, 0], sizes = [1, 64], strides = [1, 1]} : vector<9x64xf32> to vector<1x64xf32>
    %cst_85 = arith.constant dense<0.000000e+00> : vector<16xf32>
    %283 = vector.multi_reduction <add>, %280, %cst_85 [1] : vector<16x64xf32> to vector<16xf32>
    %284 = vector.shape_cast %283 : vector<16xf32> to vector<16x1xf32>
    %cst_86 = arith.constant 6.400000e+01 : f32
    %285 = vector.broadcast %cst_86 : f32 to vector<16x1xf32>
    %286 = arith.divf %284, %285 : vector<16x1xf32>
    %287 = vector.broadcast %286 : vector<16x1xf32> to vector<16x64xf32>
    %288 = arith.subf %280, %287 : vector<16x64xf32>
    %289 = arith.mulf %288, %288 : vector<16x64xf32>
    %cst_87 = arith.constant dense<0.000000e+00> : vector<16xf32>
    %290 = vector.multi_reduction <add>, %289, %cst_87 [1] : vector<16x64xf32> to vector<16xf32>
    %291 = vector.shape_cast %290 : vector<16xf32> to vector<16x1xf32>
    %cst_88 = arith.constant 6.400000e+01 : f32
    %292 = vector.broadcast %cst_88 : f32 to vector<16x1xf32>
    %293 = arith.divf %291, %292 : vector<16x1xf32>
    %294 = vector.broadcast %286 : vector<16x1xf32> to vector<16x64xf32>
    %295 = arith.subf %280, %294 : vector<16x64xf32>
    %cst_89 = arith.constant 9.99999974E-6 : f32
    %296 = vector.broadcast %cst_89 : f32 to vector<16x1xf32>
    %297 = arith.addf %293, %296 : vector<16x1xf32>
    %298 = math.rsqrt %297 : vector<16x1xf32>
    %299 = vector.broadcast %298 : vector<16x1xf32> to vector<16x64xf32>
    %300 = arith.mulf %295, %299 : vector<16x64xf32>
    %301 = vector.broadcast %281 : vector<1x64xf32> to vector<16x64xf32>
    %302 = arith.mulf %300, %301 : vector<16x64xf32>
    %303 = vector.broadcast %282 : vector<1x64xf32> to vector<16x64xf32>
    %304 = arith.addf %302, %303 : vector<16x64xf32>
    %c1088 = arith.constant 1088 : index
    %c0_90 = arith.constant 0 : index
    %305 = vector.load %arg2[%c1088, %c0_90] : memref<1216x64xbf16, #tpu.memory_space<vmem>>, vector<128x64xbf16>
    %306 = arith.truncf %304 : vector<16x64xf32> to vector<16x64xbf16>
    %cst_91 = arith.constant dense<0.000000e+00> : vector<16x128xf32>
    %307 = tpu.matmul %306, %305, %cst_91 {dimension_numbers = #tpu.dot_dimension_numbers<[1], [1], [0], [0], [0, 0, 1, 0], [], []>} : vector<16x64xbf16>, vector<128x64xbf16>, vector<16x128xf32> -> vector<16x128xf32>
    %c0_92 = arith.constant 0 : index
    %c0_93 = arith.constant 0 : index
    %308 = vector.load %arg9[%c0_92, %c0_93] : memref<1x128xf32, #tpu.memory_space<vmem>>, vector<1x128xf32>
    %309 = vector.broadcast %308 : vector<1x128xf32> to vector<16x128xf32>
    %310 = arith.addf %307, %309 : vector<16x128xf32>
    %c0_94 = arith.constant 0 : index
    %c0_95 = arith.constant 0 : index
    %311 = vector.load %arg10[%c0_94, %c0_95] : memref<16x128xf32, #tpu.memory_space<vmem>>, vector<16x128xf32>
    tpu.vector_store %arg10[%c0_94, %c0_95], %310 {strides = array<i32>} : memref<16x128xf32, #tpu.memory_space<vmem>>, vector<16x128xf32>,
    return
  }
  func.func @transform_0(%arg0: i32) -> (i32, i32, i32) {
    %c0_i32 = arith.constant 0 : i32
    %c0_i32_0 = arith.constant 0 : i32
    %c0_i32_1 = arith.constant 0 : i32
    return %arg0, %c0_i32, %c0_i32_0 : i32, i32, i32
  }
  func.func @transform_1(%arg0: i32) -> (i32, i32) {
    %c0_i32 = arith.constant 0 : i32
    %c0_i32_0 = arith.constant 0 : i32
    %c0_i32_1 = arith.constant 0 : i32
    return %c0_i32, %c0_i32_0 : i32, i32
  }
  func.func @transform_2(%arg0: i32) -> (i32, i32) {
    %c0_i32 = arith.constant 0 : i32
    %c0_i32_0 = arith.constant 0 : i32
    %c0_i32_1 = arith.constant 0 : i32
    return %c0_i32, %c0_i32_0 : i32, i32
  }
  func.func @transform_3(%arg0: i32) -> (i32, i32) {
    %c0_i32 = arith.constant 0 : i32
    %c0_i32_0 = arith.constant 0 : i32
    %c0_i32_1 = arith.constant 0 : i32
    return %c0_i32, %c0_i32_0 : i32, i32
  }
  func.func @transform_4(%arg0: i32) -> (i32, i32) {
    %c0_i32 = arith.constant 0 : i32
    %c0_i32_0 = arith.constant 0 : i32
    %c0_i32_1 = arith.constant 0 : i32
    return %c0_i32, %c0_i32_0 : i32, i32
  }
  func.func @transform_5(%arg0: i32) -> (i32, i32, i32) {
    %c0_i32 = arith.constant 0 : i32
    %c0_i32_0 = arith.constant 0 : i32
    %c0_i32_1 = arith.constant 0 : i32
    %c0_i32_2 = arith.constant 0 : i32
    return %c0_i32, %c0_i32_0, %c0_i32_1 : i32, i32, i32
  }
  func.func @transform_6(%arg0: i32) -> (i32, i32, i32) {
    %c0_i32 = arith.constant 0 : i32
    %c0_i32_0 = arith.constant 0 : i32
    %c0_i32_1 = arith.constant 0 : i32
    %c0_i32_2 = arith.constant 0 : i32
    return %c0_i32, %c0_i32_0, %c0_i32_1 : i32, i32, i32
  }
  func.func @transform_7(%arg0: i32) -> (i32, i32, i32) {
    %c0_i32 = arith.constant 0 : i32
    %c0_i32_0 = arith.constant 0 : i32
    %c0_i32_1 = arith.constant 0 : i32
    %c0_i32_2 = arith.constant 0 : i32
    return %c0_i32, %c0_i32_0, %c0_i32_1 : i32, i32, i32
  }
  func.func @transform_8(%arg0: i32) -> (i32, i32) {
    %c0_i32 = arith.constant 0 : i32
    %c0_i32_0 = arith.constant 0 : i32
    %c0_i32_1 = arith.constant 0 : i32
    return %c0_i32, %c0_i32_0 : i32, i32
  }
  func.func @transform_9(%arg0: i32) -> (i32, i32) {
    %c0_i32 = arith.constant 0 : i32
    %c0_i32_0 = arith.constant 0 : i32
    return %arg0, %c0_i32 : i32, i32
  }
}

</mosaic_0001>

<bundles_post_ra>
// kernel: tpu_custom_call.1
= control target key start
LH: loop header
LB: loop body
LE: loop exit
PB: predicated region body
PF: predicated region fallthrough
CT: control target
= control target key end

     0   :  { %v2195_v2 = vmov 0   ;;  %s2769_s0 = inlined_call_operand.vmem [shape: s32[1,16,1], index: 0, kind: input, shape index: {}]   ;;  %s2770_s1 = inlined_call_operand.vmem [shape: bf16[1216,64], index: 1, kind: input, shape index: {}]   ;;  %s2771_s2 = inlined_call_operand.vmem [shape: f32[16,64], index: 2, kind: input, shape index: {}]   ;;  %s2772_s3 = inlined_call_operand.vmem [shape: f32[32,32], index: 3, kind: input, shape index: {}]   ;;  %s2773_s4 = inlined_call_operand.vmem [shape: f32[2,64], index: 4, kind: input, shape index: {}]   ;;  %s2774_s5 = inlined_call_operand.vmem [shape: f32[2,9,64], index: 5, kind: input, shape index: {}]   ;;  %s2775_s6 = inlined_call_operand.vmem [shape: f32[2,1,192], index: 6, kind: input, shape index: {}]   ;;  %s2776_s7 = inlined_call_operand.vmem [shape: f32[2,1,128], index: 7, kind: input, shape index: {}]   ;;  %s2777_s8 = inlined_call_operand.vmem [shape: f32[1,128], index: 8, kind: input, shape index: {}]   ;;  %s2778_s9 = inlined_call_operand.hbm [shape: f32[16,128], index: 9, kind: output, shape index: {}]  }
   0x1   :  { %v34_v0 = vld [vmem:[%s2769_s0] sm:$0xff]  ;;  %v2007_v1 = vld [vmem:[%s2770_s1 + $0x18] sm:$0xff]  ;;  %2089 = vset.pattern.permute.xlu0 %v2195_v2 }
   0x2   :  { %39 = vperm.xlu0 %2089, %v34_v0   ;;  %93 = vmatpush.bf16.msra.mxu0 %v2007_v1 }
   0x3   :  { %14 = vsyncpa [#allocation3], 0  ;;  %v35_v3 = vld [vmem:[%s2769_s0 + $0x8] sm:$0xff]  ;;  %v2006_v4 = vld [vmem:[%s2770_s1 + $0x10] sm:$0xff]  ;;  %v36_v7 = vlaneseq  ;;  %v2196_v11 = vmov 0.0   ;;  %vm85_vm2 = vcmask 523264  }
   0x4   :  { %v2005_v5 = vld [vmem:[%s2770_s1 + $0x8] sm:$0xff]  ;;  %v2004_v6 = vld [vmem:[%s2770_s1] sm:$0xff]  ;;  %v2197_v23 = vmov 64.0   ;;  %v2015_v26 = vld [vmem:[%s2770_s1 + $0x58] sm:$0xff]  ;;  %s2199_s30 = smov 96   ;;  %vm386_vm10 = vcmask 261120  }
   0x5   :  { %v37_v9 = vand.u32 127, %v36_v7  ;;  %v59_v15 = vld [vmem:[%s2771_s2] sm:$0xff]  ;;  %v60_v19 = vld [vmem:[%s2771_s2 + $0x8] sm:$0xff]  ;;  %2107 = vrcp.f32 %v2197_v23  ;;  %v324_v28 = vsel %vm85_vm2, %v2015_v26, 0  ;;  %v2014_v29 = vld [vmem:[%s2770_s1 + $0x50] sm:$0xff]  ;;  %s2200_s24 = smov 32  }
   0x6   :  { %94 = vmatpush.bf16.msra.mxu0 %v2006_v4  ;;  %338 = vmatpush.bf16.xpose.msra.mxu1 %v324_v28  ;;  %v321_v31 = vsel %vm85_vm2, %v2014_v29, 0  ;;  %v2013_v33 = vld [vmem:[%s2770_s1 + $0x48] sm:$0xff]  ;;  %v2012_v39 = vld [vmem:[%s2770_s1 + $0x40] sm:$0xff]  ;;  %v2011_v48 = vld [vmem:[%s2770_s1 + $0x38] sm:$0xff]  ;;  %s2201_s28 = smov [#allocation2]   ;;  %s1664_s11 = sshll.u32 %s2778_s9, 4  ;;  %s1665_s11 = int_to_ptr.hbm [resolvable:$true] %s1664_s11 }
   0x7   :  { %v318_v36 = vsel %vm85_vm2, %v2013_v33, 0  ;;  %v315_v43 = vsel %vm85_vm2, %v2012_v39, 0  ;;  %v2019_v49 = vld [vmem:[%s2770_s1 + $0x78] sm:$0xff]  ;;  %v312_v50 = vsel %vm85_vm2, %v2011_v48, 0  ;;  %v2010_v52 = vld [vmem:[%s2770_s1 + $0x30] sm:$0xff]  ;;  %v2009_v56 = vld [vmem:[%s2770_s1 + $0x28] sm:$0xff] }
   0x8   :  { %v336_v51 = vsel %vm85_vm2, %v2019_v49, 0  ;;  %v2018_v53 = vld [vmem:[%s2770_s1 + $0x70] sm:$0xff]  ;;  %v309_v54 = vsel %vm85_vm2, %v2010_v52, 0  ;;  %v2017_v57 = vld [vmem:[%s2770_s1 + $0x68] sm:$0xff]  ;;  %v306_v58 = vsel %vm85_vm2, %v2009_v56, 0  ;;  %v2008_v60 = vld [vmem:[%s2770_s1 + $0x20] sm:$0xff] }
   0x9   :  { %356 = vmatpush.bf16.xpose.msra.mxu3 %v336_v51  ;;  %v333_v55 = vsel %vm85_vm2, %v2018_v53, 0  ;;  %v330_v59 = vsel %vm85_vm2, %v2017_v57, 0  ;;  %v2016_v61 = vld [vmem:[%s2770_s1 + $0x60] sm:$0xff]  ;;  %v303_v62 = vsel %vm85_vm2, %v2008_v60, 0  ;;  %s2202_s12 = smov 128   ;;  %s2203_s13 = smov 8  }
   0xa   :  { %42 = vperm.xlu0 %2089, %v35_v3   ;;  %95 = vmatpush.bf16.msra.mxu0 %v2005_v5  ;;  %v327_v63 = vsel %vm85_vm2, %v2016_v61, 0 }
   0xb   :  { %v2108_v24 = vpop.eup %2107 }
   0xc   :  { %v112_v25 = vmul.f32 64.0, %v2108_v24  ;;  %vm116_vm3 = vweird.f32 %v2108_v24 }
   0xe   :  { %96 = vmatpush.bf16.msra.mxu0 %v2004_v6  ;;  %v113_v27 = vsub.f32 1.0, %v112_v25  ;;  %339 = vmatpush.bf16.xpose.msra.mxu1 %v321_v31 }
  0x10   :  { %v114_v30 = vmul.f32 %v2108_v24, %v113_v27 }
  0x11   :  { %357 = vmatpush.bf16.xpose.msra.mxu3 %v333_v55 }
  0x12   :  { %v115_v32 = vadd.f32 %v2108_v24, %v114_v30  ;;  %v233_v30 = vld [vmem:[%s2775_s6] sm:$0x3] }
  0x13   :  { %v235_v33 = vperm.slane %v233_v30, 0 }
  0x14   :  { %v2292_v34 = vsel %vm116_vm3, %v2108_v24, %v115_v32  ;;  %v2101_v24 = vld [vmem:[%s2773_s4 + $0x1] ss:$0 sm:$0xff]  ;;  %v236_v32 = vperm.slane %v233_v30, 1 }
  0x16   :  { %340 = vmatpush.bf16.xpose.msra.mxu1 %v318_v36 }
  0x19   :  { %358 = vmatpush.bf16.xpose.msra.mxu3 %v330_v59 }
  0x1e   :  { %341 = vmatpush.bf16.xpose.msra.mxu1 %v315_v43 }
  0x21   :  { %359 = vmatpush.bf16.xpose.msra.mxu3 %v327_v63 }
  0x26   :  { %342 = vmatpush.bf16.xpose.msra.mxu1 %v312_v50 }
  0x2e   :  { %343 = vmatpush.bf16.xpose.msra.mxu1 %v309_v54  ;;  %v2366_v54 = vld [vmem:[%s2772_s3] sm:$0xff] }
  0x36   :  { %344 = vmatpush.bf16.xpose.msra.mxu1 %v306_v58  ;;  %v2373_v58 = vld [vmem:[%s2772_s3 + $0x8] sm:$0xff] }
  0x3e   :  { %345 = vmatpush.bf16.xpose.msra.mxu1 %v303_v62  ;;  %v2380_v62 = vld [vmem:[%s2772_s3 + $0x10] sm:$0xff] }
  0x74   :  { %v40_v8 = vpop.permute.xlu0 %39 }
  0x75   :  { %vm44_vm0 = vcmp.eq.s32.totalorder %v37_v9, %v40_v8 }
  0x76   :  { %v1676_v12 = vsel %vm44_vm0, 1.0, %v2196_v11 }
  0x7c   :  { %v43_v10 = vpop.permute.xlu0 %42 }
  0x7d   :  { %vm45_vm1 = vcmp.eq.s32.totalorder %v37_v9, %v43_v10 }
  0x7e   :  { %v1677_v13 = vsel %vm45_vm1, 1.0, %v2196_v11 }
  0x7f   :  { %v50_v14 = vpack.c.bf16 %v1677_v13, %v1676_v12 }
  0x81   :  { %1694 = vmatmul.msk.bf16.vlgmr.msra.gmra.mxu0 %vm85_vm2, %v50_v14 }
  0xfe   :  { %v98_v16 = vpop.f32.mrf.mxu0 }
  0xff   :  { %v99_v17 = vadd.f32 %v98_v16, %v59_v15 }
 0x101   :  { %v105_v18 = vsel %vm85_vm2, %v99_v17, 0.0 }
 0x102   :  { %106 = vadd.xlane.f32.xlu1 %v105_v18 }
 0x106   :  { %v100_v20 = vpop.f32.mrf.mxu0 }
 0x107   :  { %v101_v21 = vadd.f32 %v100_v20, %v60_v19  ;;  %v2100_v19 = vld [vmem:[%s2773_s4] ss:$0 sm:$0xff]  ;;  %s2198_s4 = smov 64  }
 0x109   :  { %v108_v22 = vsel %vm85_vm2, %v101_v21, 0.0 }
 0x10a   :  { %109 = vadd.xlane.f32.xlu1 %v108_v22 }
 0x175   :  { %v107_v35 = vpop.xlane.xlu1 %106 }
 0x176   :  { %v118_v37 = vmul.f32 %v2292_v34, %v107_v35 }
 0x178   :  { %v120_v38 = vsub.f32 %v99_v17, %v118_v37 }
 0x17a   :  { %v122_v40 = vmul.f32 %v120_v38, %v120_v38 }
 0x17c   :  { %v124_v41 = vsel %vm85_vm2, %v122_v40, 0.0 }
 0x17d   :  { %125 = vadd.xlane.f32.xlu2 %v124_v41  ;;  %v110_v42 = vpop.xlane.xlu1 %109 }
 0x17e   :  { %v119_v44 = vmul.f32 %v2292_v34, %v110_v42 }
 0x180   :  { %v121_v45 = vsub.f32 %v101_v21, %v119_v44 }
 0x182   :  { %v123_v46 = vmul.f32 %v121_v45, %v121_v45 }
 0x184   :  { %v127_v47 = vsel %vm85_vm2, %v123_v46, 0.0 }
 0x185   :  { %128 = vadd.xlane.f32.xlu2 %v127_v47 }
 0x1f0   :  { %v126_v0 = vpop.xlane.xlu2 %125 }
 0x1f1   :  { %v130_v1 = vmul.f32 %v126_v0, %v2292_v34 }
 0x1f3   :  { %v132_v2 = vadd.f32 1e-05, %v130_v1 }
 0x1f5   :  { %2109 = vrsqrt.f32 %v132_v2  ;;  %vm140_vm5 = vweird.f32 %v132_v2 }
 0x1f8   :  { %v129_v3 = vpop.xlane.xlu2 %128 }
 0x1f9   :  { %v131_v4 = vmul.f32 %v129_v3, %v2292_v34 }
 0x1fb   :  { %v2110_v5 = vpop.eup %2109  ;;  %v133_v6 = vadd.f32 1e-05, %v131_v4 }
 0x1fc   :  { %v135_v7 = vmul.f32 %v2110_v5, %v132_v2  ;;  %vm141_vm4 = vweird.f32 %v2110_v5  ;;  %v2387_v2 = vld [vmem:[%s2772_s3 + $0x18] sm:$0xff] }
 0x1fd   :  { %2111 = vrsqrt.f32 %v133_v6  ;;  %vm142_vm6 = vmor %vm140_vm5, %vm141_vm4  ;;  %vm150_vm8 = vweird.f32 %v133_v6 }
 0x1fe   :  { %v136_v8 = vmul.f32 %v2110_v5, %v135_v7 }
 0x200   :  { %v137_v9 = vmul.f32 0.5, %v136_v8 }
 0x202   :  { %v138_v10 = vsub.f32 1.5, %v137_v9 }
 0x203   :  { %v2112_v11 = vpop.eup %2111 }
 0x204   :  { %v139_v12 = vmul.f32 %v2110_v5, %v138_v10  ;;  %v145_v13 = vmul.f32 %v2112_v11, %v133_v6  ;;  %vm151_vm7 = vweird.f32 %v2112_v11 }
 0x205   :  { %vm152_vm9 = vmor %vm150_vm8, %vm151_vm7 }
 0x206   :  { %v146_v14 = vmul.f32 %v2112_v11, %v145_v13  ;;  %v143_v15 = vsel %vm142_vm6, %v2110_v5, %v139_v12 }
 0x207   :  { %v154_v18 = vmul.f32 %v143_v15, %v120_v38 }
 0x208   :  { %v147_v16 = vmul.f32 0.5, %v146_v14 }
 0x209   :  { %v157_v23 = vmul.f32 %v2100_v19, %v154_v18 }
 0x20a   :  { %v148_v17 = vsub.f32 1.5, %v147_v16 }
 0x20b   :  { %v2343_v26 = vadd.f32 %v2101_v24, %v157_v23 }
 0x20c   :  { %v149_v20 = vmul.f32 %v2112_v11, %v148_v17 }
 0x20e   :  { %v153_v21 = vsel %vm152_vm9, %v2112_v11, %v149_v20 }
 0x20f   :  { %v155_v22 = vmul.f32 %v153_v21, %v121_v45 }
 0x211   :  { %v158_v25 = vmul.f32 %v2100_v19, %v155_v22 }
 0x213   :  { %v2345_v27 = vadd.f32 %v2101_v24, %v158_v25 }
 0x215   :  { %v232_v28 = vpack.c.bf16 %v2345_v27, %v2343_v26 }
 0x217   :  { %1743 = vmatmul.msk.bf16.vlgmr.msra.gmra.mxu1 %vm85_vm2, %v232_v28  ;;  %1744 = vmatmul.msk.bf16.vlgmr.msra.gmra.mxu3 %vm85_vm2, %v232_v28 }
 0x294   :  { %v347_v29 = vpop.f32.mrf.mxu1 }
 0x295   :  { %v348_v37 = vadd.f32 %v347_v29, %v235_v33 }
 0x29a   :  { %v361_v31 = vpop.f32.mrf.mxu3 }
 0x29b   :  { %v362_v35 = vadd.f32 %v361_v31, %v236_v32 }
 0x29c   :  { %v349_v36 = vpop.f32.mrf.mxu1 }
 0x29d   :  { %v366_v39 = vpack.c.bf16 %v362_v35, %v348_v37  ;;  %v350_v40 = vadd.f32 %v349_v36, %v235_v33 }
 0x29f   :  { %v370_v43 = vunpack.c.l.b16 %v366_v39  ;;  %v375_v44 = vunpack.c.h.b16 %v366_v39 }
 0x2a2   :  { %v363_v38 = vpop.f32.mrf.mxu3 }
 0x2a3   :  { %v364_v41 = vadd.f32 %v363_v38, %v236_v32 }
 0x2a5   :  { %v367_v42 = vpack.c.bf16 %v364_v41, %v350_v40 }
 0x2a7   :  { %v371_v45 = vunpack.c.l.b16 %v367_v42  ;;  %v376_v46 = vunpack.c.h.b16 %v367_v42 }
 0x2a9   :  { %v372_v47 = vpack.c.b16 %v371_v45, %v370_v43  ;;  %v2354_v48 = vpack.c.b16 %v376_v46, %v375_v44  ;;  %v2023_v44 = vld [vmem:[%s2770_s1 + $0x98] sm:$0xff]  ;;  %v2022_v46 = vld [vmem:[%s2770_s1 + $0x90] sm:$0xff] }
 0x2aa   :  { %v534_v45 = vsel %vm85_vm2, %v2023_v44, 0 }
 0x2ab   :  { %382 = vrot.lane.b32.xlu2 %v372_v47, %s2198_s4  ;;  %373 = vrot.lane.b32.xlu0 %v372_v47, %s2199_s30 }
 0x305   :  { %v383_v52 = vpop.permute.xlu2 %382 }
 0x306   :  { %v394_v53 = vsel %vm386_vm10, %v383_v52, 0  ;;  %v2020_v52 = vld [vmem:[%s2770_s1 + $0x80] sm:$0xff] }
 0x31d   :  { %v374_v49 = vpop.permute.xlu0 %373 }
 0x31e   :  { %384 = vrot.lane.b32.xlu1 %v374_v49, %s2198_s4 }
 0x390   :  { %v385_v50 = vpop.permute.xlu1 %384 }
 0x391   :  { %v397_v51 = vsel %vm386_vm10, %v385_v50, 0 }
 0x392   :  { %405 = vmatpush.bf16.xpose.msrb.mxu3 %v397_v51 }
 0x39a   :  { %406 = vmatpush.bf16.xpose.msrb.mxu3 %v394_v53 }
 0x3a1   :  { %1745 = vmatmul.msk.bf16.vlgmr.msrb.gmra.mxu3 %vm386_vm10, %v372_v47 }
 0x3a2   :  { %540 = vmatpush.bf16.xpose.msra.mxu3 %v534_v45 }
 0x3b1   :  { %1746 = vmatmul.msk.bf16.gmra.mxu3 %vm386_vm10, %v374_v49  ;;  %v2021_v49 = vld [vmem:[%s2770_s1 + $0x88] sm:$0xff] }
 0x3b2   :  { %v528_v51 = vsel %vm85_vm2, %v2021_v49, 0 }
 0x424   :  { %v408_v55 = vpop.f32.mrf.mxu3 }
 0x425   :  { %v409_v56 = vadd.f32 %v408_v55, %v2366_v54  ;;  %v525_v55 = vsel %vm85_vm2, %v2020_v52, 0 }
 0x427   :  { %v418_v57 = vsel %vm386_vm10, %v409_v56, -inf }
 0x428   :  { %419 = vmax.xlane.f32.xlu0 %v418_v57 }
 0x42c   :  { %v410_v59 = vpop.f32.mrf.mxu3 }
 0x42d   :  { %v411_v60 = vadd.f32 %v410_v59, %v2373_v58 }
 0x42f   :  { %v421_v61 = vsel %vm386_vm10, %v411_v60, -inf }
 0x430   :  { %422 = vmax.xlane.f32.xlu2 %v421_v61 }
 0x434   :  { %v413_v63 = vpop.f32.mrf.mxu3 }
 0x435   :  { %v414_v0 = vadd.f32 %v413_v63, %v2380_v62 }
 0x437   :  { %v424_v1 = vsel %vm386_vm10, %v414_v0, -inf }
 0x438   :  { %425 = vmax.xlane.f32.xlu1 %v424_v1 }
 0x43c   :  { %v415_v3 = vpop.f32.mrf.mxu3 }
 0x43d   :  { %v416_v4 = vadd.f32 %v415_v3, %v2387_v2  ;;  %v2423_v3 = vld [vmem:[%s2774_s5] sm:$0xff] }
 0x43e   :  { %v602_v45 = vperm.slane %v2423_v3, 1 }
 0x43f   :  { %v427_v5 = vsel %vm386_vm10, %v416_v4, -inf }
 0x440   :  { %428 = vmax.xlane.f32.xlu0 %v427_v5 }
 0x49b   :  { %v420_v6 = vpop.xlane.xlu0 %419 }
 0x49c   :  { %v430_v7 = vsub.f32 %v409_v56, %v420_v6 }
 0x49e   :  { %v434_v8 = vmul.f32 1.442695, %v430_v7 }
 0x4a0   :  { %2113 = vpow2.f32 %v434_v8 }
 0x4a3   :  { %v423_v9 = vpop.xlane.xlu2 %422 }
 0x4a4   :  { %v431_v10 = vsub.f32 %v411_v60, %v423_v9 }
 0x4a6   :  { %v2114_v11 = vpop.eup %2113  ;;  %v436_v12 = vmul.f32 1.442695, %v431_v10 }
 0x4a7   :  { %v442_v13 = vsel %vm386_vm10, %v2114_v11, 0.0 }
 0x4a8   :  { %2115 = vpow2.f32 %v436_v12  ;;  %443 = vadd.xlane.f32.xlu0 %v442_v13 }
 0x4ab   :  { %v426_v14 = vpop.xlane.xlu1 %425 }
 0x4ac   :  { %v432_v15 = vsub.f32 %v414_v0, %v426_v14 }
 0x4ae   :  { %v2116_v16 = vpop.eup %2115  ;;  %v438_v17 = vmul.f32 1.442695, %v432_v15 }
 0x4af   :  { %v445_v18 = vsel %vm386_vm10, %v2116_v16, 0.0 }
 0x4b0   :  { %2117 = vpow2.f32 %v438_v17  ;;  %446 = vadd.xlane.f32.xlu2 %v445_v18 }
 0x4b3   :  { %v429_v19 = vpop.xlane.xlu0 %428 }
 0x4b4   :  { %v433_v20 = vsub.f32 %v416_v4, %v429_v19  ;;  %v500_v4 = vperm.slane %v2423_v3, 0 }
 0x4b6   :  { %v2118_v21 = vpop.eup %2117  ;;  %v440_v22 = vmul.f32 1.442695, %v433_v20 }
 0x4b7   :  { %v448_v23 = vsel %vm386_vm10, %v2118_v21, 0.0 }
 0x4b8   :  { %2119 = vpow2.f32 %v440_v22  ;;  %449 = vadd.xlane.f32.xlu1 %v448_v23 }
 0x4bc   :  { %379 = vrot.lane.b32.xlu0 %v2354_v48, %s2199_s30 }
 0x4be   :  { %v2120_v24 = vpop.eup %2119 }
 0x4bf   :  { %v451_v25 = vsel %vm386_vm10, %v2120_v24, 0.0 }
 0x4c0   :  { %452 = vadd.xlane.f32.xlu2 %v451_v25 }
 0x51b   :  { %v444_v29 = vpop.xlane.xlu0 %443 }
 0x523   :  { %v447_v28 = vpop.xlane.xlu2 %446 }
 0x524   :  { %2121 = vrcp.f32 %v447_v28 }
 0x525   :  { %2123 = vrcp.f32 %v444_v29 }
 0x52a   :  { %v2122_v30 = vpop.eup %2121 }
 0x52b   :  { %v2124_v32 = vpop.eup %2123  ;;  %v459_v33 = vmul.f32 %v2122_v30, %v2116_v16  ;;  %v450_v38 = vpop.xlane.xlu1 %449 }
 0x52c   :  { %v458_v35 = vmul.f32 %v2124_v32, %v2114_v11 }
 0x52e   :  { %v380_v31 = vpop.permute.xlu0 %379  ;;  %v462_v37 = vpack.c.bf16 %v459_v33, %v458_v35 }
 0x52f   :  { %476 = vmatpush.bf16.msrb.mxu0 %v380_v31 }
 0x533   :  { %477 = vmatpush.bf16.msrb.mxu0 %v2354_v48  ;;  %v453_v36 = vpop.xlane.xlu2 %452  ;;  %v531_v48 = vsel %vm85_vm2, %v2022_v46, 0 }
 0x534   :  { %2125 = vrcp.f32 %v453_v36  ;;  %541 = vmatpush.bf16.xpose.msra.mxu3 %v531_v48 }
 0x535   :  { %2127 = vrcp.f32 %v450_v38  ;;  %v596_v38 = vperm.slane %v2423_v3, 2 }
 0x536   :  { %1747 = vmatmul.msk.bf16.vlgmr.msrb.gmra.mxu0 %vm386_vm10, %v462_v37 }
 0x53a   :  { %v2126_v39 = vpop.eup %2125 }
 0x53b   :  { %v2128_v40 = vpop.eup %2127  ;;  %v461_v41 = vmul.f32 %v2126_v39, %v2120_v24 }
 0x53c   :  { %v460_v42 = vmul.f32 %v2128_v40, %v2118_v21  ;;  %542 = vmatpush.bf16.xpose.msra.mxu3 %v528_v51 }
 0x53e   :  { %v463_v43 = vpack.c.bf16 %v461_v41, %v460_v42  ;;  %v599_v42 = vperm.slane %v2423_v3, 3 }
 0x544   :  { %543 = vmatpush.bf16.xpose.msra.mxu3 %v525_v55 }
 0x546   :  { %1748 = vmatmul.msk.bf16.gmra.mxu0 %vm386_vm10, %v463_v43 }
 0x5b3   :  { %v479_v47 = vpop.f32.mrf.mxu0 }
 0x5bb   :  { %v481_v50 = vpop.f32.mrf.mxu0 }
 0x5c3   :  { %v484_v53 = vpop.f32.mrf.mxu0 }
 0x5cb   :  { %v486_v56 = vpop.f32.mrf.mxu0 }
 0x5cc   :  { %v2090_v57 = vpack.i.bf16 %v486_v56, %v484_v53 }
 0x5ce   :  { %2091 = vrot.lane.b32.xlu1 %v2090_v57, %s2200_s24 }
 0x640   :  { %v2092_v59 = vpop.permute.xlu1 %2091 }
 0x641   :  { %v2094_v60 = vunpack.i.h.bf16 %v2092_v59  ;;  %v2093_v61 = vunpack.i.l.bf16 %v2092_v59  ;;  %v2031_v59 = vld [vmem:[%s2770_s1 + $0xd8] sm:$0xff] }
 0x643   :  { %v498_v63 = vsel %vm386_vm10, %v481_v50, %v2094_v60  ;;  %v497_v0 = vsel %vm386_vm10, %v479_v47, %v2093_v61  ;;  %v725_v60 = vsel %vm85_vm2, %v2031_v59, 0  ;;  %v2030_v61 = vld [vmem:[%s2770_s1 + $0xd0] sm:$0xff] }
 0x644   :  { %v499_v1 = vpack.c.bf16 %v498_v63, %v497_v0  ;;  %727 = vmatpush.bf16.xpose.msra.mxu0 %v725_v60  ;;  %v722_v63 = vsel %vm85_vm2, %v2030_v61, 0  ;;  %v2029_v0 = vld [vmem:[%s2770_s1 + $0xc8] sm:$0xff]  ;;  %v2035_v60 = vld [vmem:[%s2770_s1 + $0xf8] sm:$0xff]  ;;  %v2034_v61 = vld [vmem:[%s2770_s1 + $0xf0] sm:$0xff] }
 0x646   :  { %1765 = vmatmul.msk.bf16.vlgmr.msra.gmra.mxu3 %vm85_vm2, %v499_v1 }
 0x64c   :  { %728 = vmatpush.bf16.xpose.msra.mxu0 %v722_v63  ;;  %v2033_v63 = vld [vmem:[%s2770_s1 + $0xe8] sm:$0xff] }
 0x6c9   :  { %v545_v5 = vpop.f32.mrf.mxu3 }
 0x6ca   :  { %v546_v6 = vadd.f32 %v545_v5, %v500_v4 }
 0x6cc   :  { %v550_v7 = vadd.f32 %v546_v6, %v2343_v26 }
 0x6ce   :  { %v552_v8 = vsel %vm85_vm2, %v550_v7, 0.0 }
 0x6cf   :  { %553 = vadd.xlane.f32.xlu2 %v552_v8 }
 0x6d1   :  { %v547_v9 = vpop.f32.mrf.mxu3 }
 0x6d2   :  { %v548_v10 = vadd.f32 %v547_v9, %v500_v4  ;;  %v719_v4 = vsel %vm85_vm2, %v2029_v0, 0  ;;  %v2032_v0 = vld [vmem:[%s2770_s1 + $0xe0] sm:$0xff] }
 0x6d3   :  { %729 = vmatpush.bf16.xpose.msra.mxu0 %v719_v4  ;;  %v2102_v4 = vld [vmem:[%s2776_s7] ss:$0 sm:$0xff] }
 0x6d4   :  { %v551_v11 = vadd.f32 %v548_v10, %v2345_v27 }
 0x6d6   :  { %v555_v12 = vsel %vm85_vm2, %v551_v11, 0.0 }
 0x6d7   :  { %556 = vadd.xlane.f32.xlu0 %v555_v12 }
 0x742   :  { %v554_v13 = vpop.xlane.xlu2 %553 }
 0x743   :  { %v558_v14 = vmul.f32 %v554_v13, %v2292_v34 }
 0x745   :  { %v560_v15 = vsub.f32 %v550_v7, %v558_v14  ;;  %v2028_v7 = vld [vmem:[%s2770_s1 + $0xc0] sm:$0xff] }
 0x747   :  { %v562_v16 = vmul.f32 %v560_v15, %v560_v15 }
 0x749   :  { %v564_v17 = vsel %vm85_vm2, %v562_v16, 0.0  ;;  %v2027_v16 = vld [vmem:[%s2770_s1 + $0xb8] sm:$0xff] }
 0x74a   :  { %v557_v18 = vpop.xlane.xlu0 %556  ;;  %565 = vadd.xlane.f32.xlu2 %v564_v17  ;;  %v713_v17 = vsel %vm85_vm2, %v2027_v16, 0 }
 0x74b   :  { %v559_v26 = vmul.f32 %v557_v18, %v2292_v34  ;;  %v2026_v18 = vld [vmem:[%s2770_s1 + $0xb0] sm:$0xff] }
 0x74d   :  { %v561_v19 = vsub.f32 %v551_v11, %v559_v26  ;;  %v716_v11 = vsel %vm85_vm2, %v2028_v7, 0  ;;  %v710_v26 = vsel %vm85_vm2, %v2026_v18, 0 }
 0x74e   :  { %730 = vmatpush.bf16.xpose.msra.mxu0 %v716_v11  ;;  %v2103_v11 = vld [vmem:[%s2774_s5 + $0x8] ss:$0 sm:$0xff] }
 0x74f   :  { %v563_v20 = vmul.f32 %v561_v19, %v561_v19 }
 0x751   :  { %v567_v21 = vsel %vm85_vm2, %v563_v20, 0.0 }
 0x752   :  { %568 = vadd.xlane.f32.xlu2 %v567_v21  ;;  %v2024_v21 = vld [vmem:[%s2770_s1 + $0xa0] sm:$0xff] }
 0x756   :  { %731 = vmatpush.bf16.xpose.msra.mxu0 %v713_v17 }
 0x75e   :  { %732 = vmatpush.bf16.xpose.msra.mxu0 %v710_v26 }
 0x7bd   :  { %v566_v27 = vpop.xlane.xlu2 %565 }
 0x7be   :  { %v570_v22 = vmul.f32 %v566_v27, %v2292_v34  ;;  %v704_v27 = vsel %vm85_vm2, %v2024_v21, 0  ;;  %v2046_v21 = vld [vmem:[%s2770_s1 + $0x150] sm:$0xff] }
 0x7c0   :  { %v572_v23 = vadd.f32 1e-05, %v570_v22 }
 0x7c2   :  { %2129 = vrsqrt.f32 %v572_v23  ;;  %vm580_vm12 = vweird.f32 %v572_v23 }
 0x7c5   :  { %v569_v24 = vpop.xlane.xlu2 %568 }
 0x7c6   :  { %v571_v25 = vmul.f32 %v569_v24, %v2292_v34 }
 0x7c8   :  { %v2130_v28 = vpop.eup %2129  ;;  %v573_v29 = vadd.f32 1e-05, %v571_v25  ;;  %v2039_v25 = vld [vmem:[%s2770_s1 + $0x118] sm:$0xff] }
 0x7c9   :  { %v575_v30 = vmul.f32 %v2130_v28, %v572_v23  ;;  %vm581_vm11 = vweird.f32 %v2130_v28  ;;  %793 = vmatpush.bf16.msra.mxu2 %v2039_v25 }
 0x7ca   :  { %2131 = vrsqrt.f32 %v573_v29  ;;  %vm582_vm13 = vmor %vm580_vm12, %vm581_vm11  ;;  %vm590_vm15 = vweird.f32 %v573_v29 }
 0x7cb   :  { %v576_v31 = vmul.f32 %v2130_v28, %v575_v30  ;;  %v2038_v30 = vld [vmem:[%s2770_s1 + $0x110] sm:$0xff] }
 0x7cd   :  { %v577_v32 = vmul.f32 0.5, %v576_v31  ;;  %794 = vmatpush.bf16.msra.mxu2 %v2038_v30 }
 0x7cf   :  { %v578_v33 = vsub.f32 1.5, %v577_v32 }
 0x7d0   :  { %v2132_v35 = vpop.eup %2131 }
 0x7d1   :  { %v579_v36 = vmul.f32 %v2130_v28, %v578_v33  ;;  %v585_v37 = vmul.f32 %v2132_v35, %v573_v29  ;;  %vm591_vm14 = vweird.f32 %v2132_v35 }
 0x7d2   :  { %vm592_vm0 = vmor %vm590_vm15, %vm591_vm14 }
 0x7d3   :  { %v583_v39 = vsel %vm582_vm13, %v2130_v28, %v579_v36  ;;  %v586_v40 = vmul.f32 %v2132_v35, %v585_v37 }
 0x7d4   :  { %v594_v41 = vmul.f32 %v583_v39, %v560_v15 }
 0x7d5   :  { %v587_v43 = vmul.f32 0.5, %v586_v40 }
 0x7d6   :  { %v597_v44 = vmul.f32 %v596_v38, %v594_v41 }
 0x7d7   :  { %v588_v46 = vsub.f32 1.5, %v587_v43 }
 0x7d8   :  { %v600_v47 = vadd.f32 %v599_v42, %v597_v44 }
 0x7d9   :  { %v589_v48 = vmul.f32 %v2132_v35, %v588_v46 }
 0x7da   :  { %v603_v49 = vadd.f32 %v602_v45, %v600_v47  ;;  %v649_v47 = vperm.slane %v2423_v3, 4 }
 0x7db   :  { %v593_v50 = vsel %vm592_vm0, %v2132_v35, %v589_v48  ;;  %v2037_v35 = vld [vmem:[%s2770_s1 + $0x108] sm:$0xff] }
 0x7dc   :  { %v605_v51 = vsel %vm85_vm2, %v603_v49, 0.0  ;;  %v595_v52 = vmul.f32 %v593_v50, %v561_v19  ;;  %v2025_v19 = vld [vmem:[%s2770_s1 + $0xa8] sm:$0xff]  ;;  %795 = vmatpush.bf16.msra.mxu2 %v2037_v35 }
 0x7dd   :  { %606 = vadd.xlane.f32.xlu1 %v605_v51  ;;  %v707_v20 = vsel %vm85_vm2, %v2025_v19, 0  ;;  %v652_v51 = vperm.slane %v2423_v3, 5  ;;  %v2047_v19 = vld [vmem:[%s2770_s1 + $0x158] sm:$0xff] }
 0x7de   :  { %v598_v53 = vmul.f32 %v596_v38, %v595_v52  ;;  %733 = vmatpush.bf16.xpose.msra.mxu0 %v707_v20  ;;  %v2036_v38 = vld [vmem:[%s2770_s1 + $0x100] sm:$0xff]  ;;  %v1019_v20 = vsel %vm85_vm2, %v2047_v19, 0 }
 0x7df   :  { %1033 = vmatpush.bf16.xpose.msrb.mxu3 %v1019_v20 }
 0x7e0   :  { %v601_v55 = vadd.f32 %v599_v42, %v598_v53  ;;  %796 = vmatpush.bf16.msra.mxu2 %v2036_v38 }
 0x7e2   :  { %v604_v56 = vadd.f32 %v602_v45, %v601_v55 }
 0x7e4   :  { %v608_v57 = vsel %vm85_vm2, %v604_v56, 0.0  ;;  %797 = vmatpush.bf16.msra.mxu2 %v2035_v60 }
 0x7e5   :  { %609 = vadd.xlane.f32.xlu2 %v608_v57 }
 0x7e6   :  { %734 = vmatpush.bf16.xpose.msra.mxu0 %v704_v27  ;;  %v1016_v27 = vsel %vm85_vm2, %v2046_v21, 0 }
 0x7e7   :  { %1034 = vmatpush.bf16.xpose.msrb.mxu3 %v1016_v27 }
 0x7e8   :  { %798 = vmatpush.bf16.msra.mxu2 %v2034_v61 }
 0x7ec   :  { %799 = vmatpush.bf16.msra.mxu2 %v2033_v63 }
 0x7f0   :  { %800 = vmatpush.bf16.msra.mxu2 %v2032_v0 }
 0x850   :  { %v607_v1 = vpop.xlane.xlu1 %606 }
 0x851   :  { %v611_v5 = vmul.f32 %v607_v1, %v2292_v34 }
 0x853   :  { %v613_v6 = vsub.f32 %v603_v49, %v611_v5 }
 0x855   :  { %v615_v8 = vmul.f32 %v613_v6, %v613_v6 }
 0x857   :  { %v617_v9 = vsel %vm85_vm2, %v615_v8, 0.0 }
 0x858   :  { %618 = vadd.xlane.f32.xlu2 %v617_v9  ;;  %v610_v10 = vpop.xlane.xlu2 %609 }
 0x859   :  { %v612_v12 = vmul.f32 %v610_v10, %v2292_v34 }
 0x85b   :  { %v614_v13 = vsub.f32 %v604_v56, %v612_v12 }
 0x85d   :  { %v616_v14 = vmul.f32 %v614_v13, %v614_v13 }
 0x85f   :  { %v620_v15 = vsel %vm85_vm2, %v616_v14, 0.0 }
 0x860   :  { %621 = vadd.xlane.f32.xlu2 %v620_v15 }
 0x8cb   :  { %v619_v22 = vpop.xlane.xlu2 %618 }
 0x8cc   :  { %v623_v23 = vmul.f32 %v619_v22, %v2292_v34  ;;  %v2045_v22 = vld [vmem:[%s2770_s1 + $0x148] sm:$0xff] }
 0x8ce   :  { %v625_v24 = vadd.f32 1e-05, %v623_v23 }
 0x8d0   :  { %2133 = vrsqrt.f32 %v625_v24  ;;  %vm633_vm3 = vweird.f32 %v625_v24 }
 0x8d3   :  { %v622_v28 = vpop.xlane.xlu2 %621 }
 0x8d4   :  { %v624_v29 = vmul.f32 %v622_v28, %v2292_v34 }
 0x8d6   :  { %v2134_v31 = vpop.eup %2133  ;;  %v626_v32 = vadd.f32 1e-05, %v624_v29  ;;  %v2044_v29 = vld [vmem:[%s2770_s1 + $0x140] sm:$0xff] }
 0x8d7   :  { %v628_v33 = vmul.f32 %v2134_v31, %v625_v24  ;;  %vm634_vm1 = vweird.f32 %v2134_v31  ;;  %v1013_v24 = vsel %vm85_vm2, %v2045_v22, 0 }
 0x8d8   :  { %2135 = vrsqrt.f32 %v626_v32  ;;  %vm635_vm4 = vmor %vm633_vm3, %vm634_vm1  ;;  %vm643_vm6 = vweird.f32 %v626_v32  ;;  %1035 = vmatpush.bf16.xpose.msrb.mxu3 %v1013_v24  ;;  %v1833_v24 = vld [vmem:[%s2775_s6 + $0x2] sm:$0x3] }
 0x8d9   :  { %v629_v36 = vmul.f32 %v2134_v31, %v628_v33  ;;  %v1010_v33 = vsel %vm85_vm2, %v2044_v29, 0 }
 0x8db   :  { %v630_v37 = vmul.f32 0.5, %v629_v36 }
 0x8dd   :  { %v631_v39 = vsub.f32 1.5, %v630_v37 }
 0x8de   :  { %v2136_v40 = vpop.eup %2135 }
 0x8df   :  { %v632_v41 = vmul.f32 %v2134_v31, %v631_v39  ;;  %v638_v42 = vmul.f32 %v2136_v40, %v626_v32  ;;  %vm644_vm5 = vweird.f32 %v2136_v40  ;;  %v2043_v39 = vld [vmem:[%s2770_s1 + $0x138] sm:$0xff] }
 0x8e0   :  { %vm645_vm7 = vmor %vm643_vm6, %vm644_vm5  ;;  %1036 = vmatpush.bf16.xpose.msrb.mxu3 %v1010_v33 }
 0x8e1   :  { %v639_v43 = vmul.f32 %v2136_v40, %v638_v42  ;;  %v636_v44 = vsel %vm635_vm4, %v2134_v31, %v632_v41  ;;  %v1007_v41 = vsel %vm85_vm2, %v2043_v39, 0 }
 0x8e2   :  { %v647_v48 = vmul.f32 %v636_v44, %v613_v6  ;;  %v2050_v44 = vld [vmem:[%s2770_s1 + $0x170] sm:$0xff] }
 0x8e3   :  { %v640_v45 = vmul.f32 0.5, %v639_v43  ;;  %v2042_v43 = vld [vmem:[%s2770_s1 + $0x130] sm:$0xff] }
 0x8e4   :  { %v650_v52 = vmul.f32 %v649_v47, %v647_v48  ;;  %v2049_v48 = vld [vmem:[%s2770_s1 + $0x168] sm:$0xff] }
 0x8e5   :  { %v641_v46 = vsub.f32 1.5, %v640_v45  ;;  %v1004_v45 = vsel %vm85_vm2, %v2042_v43, 0 }
 0x8e6   :  { %v653_v56 = vadd.f32 %v652_v51, %v650_v52  ;;  %v2048_v52 = vld [vmem:[%s2770_s1 + $0x160] sm:$0xff] }
 0x8e7   :  { %v642_v49 = vmul.f32 %v2136_v40, %v641_v46  ;;  %v1028_v46 = vsel %vm85_vm2, %v2050_v44, 0 }
 0x8e8   :  { %1037 = vmatpush.bf16.xpose.msrb.mxu3 %v1007_v41 }
 0x8e9   :  { %v646_v50 = vsel %vm645_vm7, %v2136_v40, %v642_v49  ;;  %v2051_v40 = vld [vmem:[%s2770_s1 + $0x178] sm:$0xff] }
 0x8ea   :  { %v648_v53 = vmul.f32 %v646_v50, %v614_v13  ;;  %v1031_v42 = vsel %vm85_vm2, %v2051_v40, 0  ;;  %v1025_v50 = vsel %vm85_vm2, %v2049_v48, 0 }
 0x8eb   :  { %1051 = vmatpush.bf16.xpose.msrb.mxu1 %v1031_v42 }
 0x8ec   :  { %v651_v55 = vmul.f32 %v649_v47, %v648_v53  ;;  %v2041_v47 = vld [vmem:[%s2770_s1 + $0x128] sm:$0xff] }
 0x8ed   :  { %v1001_v49 = vsel %vm85_vm2, %v2041_v47, 0 }
 0x8ee   :  { %v654_v57 = vadd.f32 %v652_v51, %v651_v55  ;;  %v2040_v51 = vld [vmem:[%s2770_s1 + $0x120] sm:$0xff]  ;;  %v1022_v55 = vsel %vm85_vm2, %v2048_v52, 0 }
 0x8ef   :  { %v998_v53 = vsel %vm85_vm2, %v2040_v51, 0 }
 0x8f0   :  { %v655_v59 = vpack.c.bf16 %v654_v57, %v653_v56  ;;  %1038 = vmatpush.bf16.xpose.msrb.mxu3 %v1004_v45 }
 0x8f2   :  { %1798 = vmatmul.msk.bf16.vlgmr.msra.gmra.mxu0 %vm85_vm2, %v655_v59 }
 0x8f3   :  { %1052 = vmatpush.bf16.xpose.msrb.mxu1 %v1028_v46 }
 0x8f8   :  { %1039 = vmatpush.bf16.xpose.msrb.mxu3 %v1001_v49 }
 0x8fb   :  { %1053 = vmatpush.bf16.xpose.msrb.mxu1 %v1025_v50 }
 0x900   :  { %1040 = vmatpush.bf16.xpose.msrb.mxu3 %v998_v53 }
 0x903   :  { %1054 = vmatpush.bf16.xpose.msrb.mxu1 %v1022_v55 }
 0x96f   :  { %v736_v1 = vpop.f32.mrf.mxu0 }
 0x970   :  { %v737_v5 = vadd.f32 %v2102_v4, %v736_v1 }
 0x972   :  { %v741_v8 = vmax.f32 %v737_v5, 0.0 }
 0x977   :  { %v738_v6 = vpop.f32.mrf.mxu0 }
 0x978   :  { %v739_v7 = vadd.f32 %v2102_v4, %v738_v6 }
 0x97a   :  { %v742_v9 = vmax.f32 %v739_v7, 0.0 }
 0x97c   :  { %v743_v10 = vpack.c.bf16 %v742_v9, %v741_v8 }
 0x97e   :  { %801 = vmatmul.bf16.vlgmr.msra.gmra.mxu2 %v743_v10 }
 0xa01   :  { %v802_v12 = vpop.f32.mrf.mxu2 }
 0xa02   :  { %v803_v13 = vadd.f32 %v2103_v11, %v802_v12 }
 0xa04   :  { %v807_v14 = vadd.f32 %v803_v13, %v653_v56 }
 0xa06   :  { %v809_v15 = vsel %vm85_vm2, %v807_v14, 0.0 }
 0xa07   :  { %810 = vadd.xlane.f32.xlu0 %v809_v15 }
 0xa09   :  { %v804_v16 = vpop.f32.mrf.mxu2 }
 0xa0a   :  { %v805_v17 = vadd.f32 %v2103_v11, %v804_v16 }
 0xa0c   :  { %v808_v18 = vadd.f32 %v805_v17, %v654_v57 }
 0xa0e   :  { %v812_v26 = vsel %vm85_vm2, %v808_v18, 0.0 }
 0xa0f   :  { %813 = vadd.xlane.f32.xlu2 %v812_v26 }
 0xa7a   :  { %v811_v23 = vpop.xlane.xlu0 %810 }
 0xa7b   :  { %v815_v25 = vmul.f32 %v811_v23, %v2292_v34 }
 0xa7d   :  { %v2527_v28 = vsub.f32 %v807_v14, %v815_v25  ;;  %v853_v14 = vperm.slane %v2423_v3, 6  ;;  %v930_v25 = vperm.slane %v1833_v24, 0 }
 0xa7f   :  { %v819_v30 = vmul.f32 %v2527_v28, %v2527_v28 }
 0xa81   :  { %v821_v31 = vsel %vm85_vm2, %v819_v30, 0.0 }
 0xa82   :  { %v814_v32 = vpop.xlane.xlu2 %813  ;;  %822 = vadd.xlane.f32.xlu0 %v821_v31 }
 0xa83   :  { %v816_v35 = vmul.f32 %v814_v32, %v2292_v34 }
 0xa85   :  { %v818_v36 = vsub.f32 %v808_v18, %v816_v35  ;;  %v856_v18 = vperm.slane %v2423_v3, 7 }
 0xa87   :  { %v820_v37 = vmul.f32 %v818_v36, %v818_v36 }
 0xa89   :  { %v824_v38 = vsel %vm85_vm2, %v820_v37, 0.0 }
 0xa8a   :  { %825 = vadd.xlane.f32.xlu2 %v824_v38 }
 0xaf5   :  { %v823_v56 = vpop.xlane.xlu0 %822 }
 0xaf6   :  { %v827_v57 = vmul.f32 %v823_v56, %v2292_v34 }
 0xaf8   :  { %v829_v59 = vadd.f32 1e-05, %v827_v57 }
 0xafa   :  { %2137 = vrsqrt.f32 %v829_v59  ;;  %vm837_vm9 = vweird.f32 %v829_v59 }
 0xafd   :  { %v826_v60 = vpop.xlane.xlu2 %825 }
 0xafe   :  { %v828_v61 = vmul.f32 %v826_v60, %v2292_v34 }
 0xb00   :  { %v2138_v63 = vpop.eup %2137  ;;  %v830_v0 = vadd.f32 1e-05, %v828_v61 }
 0xb01   :  { %v832_v1 = vmul.f32 %v2138_v63, %v829_v59  ;;  %vm838_vm8 = vweird.f32 %v2138_v63 }
 0xb02   :  { %2139 = vrsqrt.f32 %v830_v0  ;;  %vm839_vm11 = vmor %vm837_vm9, %vm838_vm8  ;;  %vm847_vm13 = vweird.f32 %v830_v0 }
 0xb03   :  { %v833_v4 = vmul.f32 %v2138_v63, %v832_v1 }
 0xb05   :  { %v834_v5 = vmul.f32 0.5, %v833_v4 }
 0xb07   :  { %v835_v6 = vsub.f32 1.5, %v834_v5 }
 0xb08   :  { %v2140_v7 = vpop.eup %2139 }
 0xb09   :  { %v836_v8 = vmul.f32 %v2138_v63, %v835_v6  ;;  %v842_v9 = vmul.f32 %v2140_v7, %v830_v0  ;;  %vm848_vm12 = vweird.f32 %v2140_v7 }
 0xb0a   :  { %vm849_vm14 = vmor %vm847_vm13, %vm848_vm12 }
 0xb0b   :  { %v843_v10 = vmul.f32 %v2140_v7, %v842_v9  ;;  %v840_v11 = vsel %vm839_vm11, %v2138_v63, %v836_v8 }
 0xb0c   :  { %v851_v15 = vmul.f32 %v840_v11, %v2527_v28  ;;  %v931_v28 = vperm.slane %v1833_v24, 1 }
 0xb0d   :  { %v844_v12 = vmul.f32 0.5, %v843_v10 }
 0xb0e   :  { %v854_v26 = vmul.f32 %v853_v14, %v851_v15 }
 0xb0f   :  { %v845_v13 = vsub.f32 1.5, %v844_v12 }
 0xb10   :  { %v2575_v21 = vadd.f32 %v856_v18, %v854_v26 }
 0xb11   :  { %v846_v16 = vmul.f32 %v2140_v7, %v845_v13 }
 0xb13   :  { %v850_v17 = vsel %vm849_vm14, %v2140_v7, %v846_v16 }
 0xb14   :  { %v852_v19 = vmul.f32 %v850_v17, %v818_v36 }
 0xb16   :  { %v855_v20 = vmul.f32 %v853_v14, %v852_v19 }
 0xb18   :  { %v2577_v27 = vadd.f32 %v856_v18, %v855_v20 }
 0xb1a   :  { %v926_v22 = vpack.c.bf16 %v2577_v27, %v2575_v21 }
 0xb1c   :  { %1882 = vmatmul.msk.bf16.vlgmr.msrb.gmra.mxu3 %vm85_vm2, %v926_v22  ;;  %1883 = vmatmul.msk.bf16.vlgmr.msrb.gmra.mxu1 %vm85_vm2, %v926_v22 }
 0xb99   :  { %v1056_v23 = vpop.f32.mrf.mxu1 }
 0xb9a   :  { %v1057_v31 = vadd.f32 %v1056_v23, %v931_v28 }
 0xb9f   :  { %v1042_v3 = vpop.f32.mrf.mxu3 }
 0xba0   :  { %v1043_v29 = vadd.f32 %v1042_v3, %v930_v25 }
 0xba1   :  { %v1058_v30 = vpop.f32.mrf.mxu1 }
 0xba2   :  { %v1061_v33 = vpack.c.bf16 %v1057_v31, %v1043_v29  ;;  %v1059_v35 = vadd.f32 %v1058_v30, %v931_v28 }
 0xba4   :  { %v1065_v38 = vunpack.c.l.b16 %v1061_v33  ;;  %v1070_v39 = vunpack.c.h.b16 %v1061_v33 }
 0xba7   :  { %v1044_v32 = vpop.f32.mrf.mxu3 }
 0xba8   :  { %v1045_v36 = vadd.f32 %v1044_v32, %v930_v25 }
 0xbaa   :  { %v1062_v37 = vpack.c.bf16 %v1059_v35, %v1045_v36  ;;  %v2055_v35 = vld [vmem:[%s2770_s1 + $0x198] sm:$0xff] }
 0xbab   :  { %v1228_v36 = vsel %vm85_vm2, %v2055_v35, 0 }
 0xbac   :  { %v1066_v40 = vunpack.c.l.b16 %v1062_v37  ;;  %v1071_v41 = vunpack.c.h.b16 %v1062_v37  ;;  %v2054_v37 = vld [vmem:[%s2770_s1 + $0x190] sm:$0xff] }
 0xbae   :  { %v1067_v42 = vpack.c.b16 %v1066_v40, %v1065_v38  ;;  %v1072_v43 = vpack.c.b16 %v1071_v41, %v1070_v39  ;;  %v1225_v39 = vsel %vm85_vm2, %v2054_v37, 0  ;;  %v2053_v40 = vld [vmem:[%s2770_s1 + $0x188] sm:$0xff] }
 0xbb0   :  { %1077 = vrot.lane.b32.xlu2 %v1067_v42, %s2198_s4  ;;  %1068 = vrot.lane.b32.xlu1 %v1067_v42, %s2199_s30 }
 0xc0a   :  { %v1078_v47 = vpop.permute.xlu2 %1077 }
 0xc0b   :  { %v1088_v48 = vsel %vm386_vm10, %v1078_v47, 0 }
 0xc22   :  { %v1069_v44 = vpop.permute.xlu1 %1068 }
 0xc23   :  { %1079 = vrot.lane.b32.xlu0 %v1069_v44, %s2198_s4 }
 0xc95   :  { %v1080_v45 = vpop.permute.xlu0 %1079 }
 0xc96   :  { %v1091_v46 = vsel %vm386_vm10, %v1080_v45, 0 }
 0xc97   :  { %1099 = vmatpush.bf16.xpose.msrb.mxu2 %v1091_v46 }
 0xc9f   :  { %1100 = vmatpush.bf16.xpose.msrb.mxu2 %v1088_v48 }
 0xca6   :  { %1884 = vmatmul.msk.bf16.vlgmr.msrb.gmra.mxu2 %vm386_vm10, %v1067_v42  ;;  %v1222_v42 = vsel %vm85_vm2, %v2053_v40, 0 }
 0xca7   :  { %1234 = vmatpush.bf16.xpose.msra.mxu2 %v1228_v36 }
 0xcaf   :  { %1235 = vmatpush.bf16.xpose.msra.mxu2 %v1225_v39 }
 0xcb6   :  { %1885 = vmatmul.msk.bf16.gmra.mxu2 %vm386_vm10, %v1069_v44 }
 0xcb7   :  { %1236 = vmatpush.bf16.xpose.msra.mxu2 %v1222_v42 }
 0xd29   :  { %v1102_v49 = vpop.f32.mrf.mxu2 }
 0xd2a   :  { %v1103_v50 = vadd.f32 %v1102_v49, %v2366_v54 }
 0xd2c   :  { %v1112_v51 = vsel %vm386_vm10, %v1103_v50, -inf }
 0xd2d   :  { %1113 = vmax.xlane.f32.xlu0 %v1112_v51 }
 0xd31   :  { %v1104_v52 = vpop.f32.mrf.mxu2 }
 0xd32   :  { %v1105_v53 = vadd.f32 %v1104_v52, %v2373_v58 }
 0xd34   :  { %v1115_v55 = vsel %vm386_vm10, %v1105_v53, -inf }
 0xd35   :  { %1116 = vmax.xlane.f32.xlu1 %v1115_v55  ;;  %v2631_v55 = vld [vmem:[%s2774_s5 + $0x10] sm:$0xff] }
 0xd39   :  { %v1107_v56 = vpop.f32.mrf.mxu2 }
 0xd3a   :  { %v1108_v57 = vadd.f32 %v1107_v56, %v2380_v62  ;;  %v1194_v56 = vperm.slane %v2631_v55, 0 }
 0xd3c   :  { %v1118_v59 = vsel %vm386_vm10, %v1108_v57, -inf }
 0xd3d   :  { %1119 = vmax.xlane.f32.xlu2 %v1118_v59 }
 0xd41   :  { %v1109_v60 = vpop.f32.mrf.mxu2 }
 0xd42   :  { %v1110_v61 = vadd.f32 %v1109_v60, %v2387_v2 }
 0xd44   :  { %v1121_v54 = vsel %vm386_vm10, %v1110_v61, -inf }
 0xd45   :  { %1122 = vmax.xlane.f32.xlu0 %v1121_v54 }
 0xd59   :  { %1074 = vrot.lane.b32.xlu0 %v1072_v43, %s2199_s30 }
 0xda0   :  { %v1114_v63 = vpop.xlane.xlu0 %1113 }
 0xda1   :  { %v1124_v0 = vsub.f32 %v1103_v50, %v1114_v63 }
 0xda3   :  { %v1128_v58 = vmul.f32 1.442695, %v1124_v0 }
 0xda5   :  { %2141 = vpow2.f32 %v1128_v58 }
 0xda8   :  { %v1117_v1 = vpop.xlane.xlu1 %1116 }
 0xda9   :  { %v1125_v4 = vsub.f32 %v1105_v53, %v1117_v1 }
 0xdab   :  { %v2142_v5 = vpop.eup %2141  ;;  %v1130_v6 = vmul.f32 1.442695, %v1125_v4 }
 0xdac   :  { %v1136_v62 = vsel %vm386_vm10, %v2142_v5, 0.0 }
 0xdad   :  { %2143 = vpow2.f32 %v1130_v6  ;;  %1137 = vadd.xlane.f32.xlu1 %v1136_v62 }
 0xdb0   :  { %v1120_v7 = vpop.xlane.xlu2 %1119 }
 0xdb1   :  { %v1126_v8 = vsub.f32 %v1108_v57, %v1120_v7 }
 0xdb3   :  { %v2144_v2 = vpop.eup %2143  ;;  %v1132_v9 = vmul.f32 1.442695, %v1126_v8 }
 0xdb4   :  { %v1139_v10 = vsel %vm386_vm10, %v2144_v2, 0.0 }
 0xdb5   :  { %2145 = vpow2.f32 %v1132_v9  ;;  %1140 = vadd.xlane.f32.xlu2 %v1139_v10 }
 0xdb8   :  { %v1123_v11 = vpop.xlane.xlu0 %1122 }
 0xdb9   :  { %v1127_v12 = vsub.f32 %v1110_v61, %v1123_v11 }
 0xdbb   :  { %v2146_v13 = vpop.eup %2145  ;;  %v1134_v14 = vmul.f32 1.442695, %v1127_v12 }
 0xdbc   :  { %v1142_v15 = vsel %vm386_vm10, %v2146_v13, 0.0 }
 0xdbd   :  { %2147 = vpow2.f32 %v1134_v14  ;;  %1143 = vadd.xlane.f32.xlu1 %v1142_v15 }
 0xdc3   :  { %v2148_v16 = vpop.eup %2147 }
 0xdc4   :  { %v1145_v17 = vsel %vm386_vm10, %v2148_v16, 0.0 }
 0xdc5   :  { %1146 = vadd.xlane.f32.xlu2 %v1145_v17 }
 0xdcb   :  { %v1075_v18 = vpop.permute.xlu0 %1074 }
 0xdcc   :  { %1170 = vmatpush.bf16.msrb.mxu0 %v1075_v18 }
 0xdd0   :  { %1171 = vmatpush.bf16.msrb.mxu0 %v1072_v43  ;;  %v2052_v43 = vld [vmem:[%s2770_s1 + $0x180] sm:$0xff] }
 0xdd1   :  { %v1219_v45 = vsel %vm85_vm2, %v2052_v43, 0 }
 0xdd2   :  { %1237 = vmatpush.bf16.xpose.msra.mxu2 %v1219_v45 }
 0xe20   :  { %v1138_v26 = vpop.xlane.xlu1 %1137 }
 0xe21   :  { %2149 = vrcp.f32 %v1138_v26 }
 0xe27   :  { %v2150_v20 = vpop.eup %2149 }
 0xe28   :  { %v1141_v19 = vpop.xlane.xlu2 %1140  ;;  %v1152_v23 = vmul.f32 %v2150_v20, %v2142_v5 }
 0xe29   :  { %2151 = vrcp.f32 %v1141_v19 }
 0xe2f   :  { %v2152_v22 = vpop.eup %2151 }
 0xe30   :  { %v1153_v24 = vmul.f32 %v2152_v22, %v2144_v2  ;;  %v1144_v25 = vpop.xlane.xlu1 %1143 }
 0xe31   :  { %2153 = vrcp.f32 %v1144_v25 }
 0xe32   :  { %v1156_v3 = vpack.c.bf16 %v1153_v24, %v1152_v23  ;;  %v1290_v23 = vperm.slane %v2631_v55, 2 }
 0xe34   :  { %1886 = vmatmul.msk.bf16.vlgmr.msrb.gmra.mxu0 %vm386_vm10, %v1156_v3 }
 0xe37   :  { %v2154_v29 = vpop.eup %2153 }
 0xe38   :  { %v1147_v28 = vpop.xlane.xlu2 %1146  ;;  %v1154_v31 = vmul.f32 %v2154_v29, %v2146_v13 }
 0xe39   :  { %2155 = vrcp.f32 %v1147_v28  ;;  %v1293_v28 = vperm.slane %v2631_v55, 3 }
 0xe3f   :  { %v2156_v30 = vpop.eup %2155 }
 0xe40   :  { %v1155_v32 = vmul.f32 %v2156_v30, %v2148_v16 }
 0xe42   :  { %v1157_v33 = vpack.c.bf16 %v1155_v32, %v1154_v31  ;;  %v1296_v31 = vperm.slane %v2631_v55, 1 }
 0xe44   :  { %1887 = vmatmul.msk.bf16.gmra.mxu0 %vm386_vm10, %v1157_v33 }
 0xeb1   :  { %v1173_v38 = vpop.f32.mrf.mxu0 }
 0xeb9   :  { %v1175_v41 = vpop.f32.mrf.mxu0 }
 0xec1   :  { %v1178_v44 = vpop.f32.mrf.mxu0 }
 0xec9   :  { %v1180_v46 = vpop.f32.mrf.mxu0 }
 0xeca   :  { %v2095_v47 = vpack.i.bf16 %v1180_v46, %v1178_v44  ;;  %v2063_v44 = vld [vmem:[%s2770_s1 + $0x1d8] sm:$0xff]  ;;  %v2062_v46 = vld [vmem:[%s2770_s1 + $0x1d0] sm:$0xff] }
 0xecb   :  { %v1420_v45 = vsel %vm85_vm2, %v2063_v44, 0  ;;  %v2064_v44 = vld [vmem:[%s2770_s1 + $0x1e0] sm:$0xff] }
 0xecc   :  { %2096 = vrot.lane.b32.xlu1 %v2095_v47, %s2200_s24  ;;  %1422 = vmatpush.bf16.xpose.msra.mxu1 %v1420_v45  ;;  %v1417_v47 = vsel %vm85_vm2, %v2062_v46, 0  ;;  %v2104_v46 = vld [vmem:[%s2776_s7 + $0x1] ss:$0 sm:$0xff]  ;;  %s1662_s24 = sshll.u32 %s2201_s28, 4  ;;  %s1663_s24 = int_to_ptr.vmem [resolvable:$true] %s1662_s24 }
 0xed4   :  { %1423 = vmatpush.bf16.xpose.msra.mxu1 %v1417_v47 }
 0xf3e   :  { %v2097_v48 = vpop.permute.xlu1 %2096 }
 0xf3f   :  { %v2099_v49 = vunpack.i.h.bf16 %v2097_v48  ;;  %v2098_v50 = vunpack.i.l.bf16 %v2097_v48  ;;  %v2061_v48 = vld [vmem:[%s2770_s1 + $0x1c8] sm:$0xff] }
 0xf41   :  { %v1192_v51 = vsel %vm386_vm10, %v1175_v41, %v2099_v49  ;;  %v1191_v52 = vsel %vm386_vm10, %v1173_v38, %v2098_v50  ;;  %v1414_v50 = vsel %vm85_vm2, %v2061_v48, 0 }
 0xf42   :  { %v1193_v53 = vpack.c.bf16 %v1192_v51, %v1191_v52  ;;  %1424 = vmatpush.bf16.xpose.msra.mxu1 %v1414_v50 }
 0xf44   :  { %1904 = vmatmul.msk.bf16.vlgmr.msra.gmra.mxu2 %vm85_vm2, %v1193_v53  ;;  %v2060_v53 = vld [vmem:[%s2770_s1 + $0x1c0] sm:$0xff] }
 0xfc7   :  { %v1239_v57 = vpop.f32.mrf.mxu2 }
 0xfc8   :  { %v1240_v59 = vadd.f32 %v1239_v57, %v1194_v56 }
 0xfca   :  { %v1244_v60 = vadd.f32 %v1240_v59, %v2575_v21 }
 0xfcc   :  { %v1246_v61 = vsel %vm85_vm2, %v1244_v60, 0.0 }
 0xfcd   :  { %1247 = vadd.xlane.f32.xlu2 %v1246_v61 }
 0xfcf   :  { %v1241_v54 = vpop.f32.mrf.mxu2 }
 0xfd0   :  { %v1242_v63 = vadd.f32 %v1241_v54, %v1194_v56 }
 0xfd2   :  { %v1245_v0 = vadd.f32 %v1242_v63, %v2577_v27 }
 0xfd4   :  { %v1249_v58 = vsel %vm85_vm2, %v1245_v0, 0.0 }
 0xfd5   :  { %1250 = vadd.xlane.f32.xlu0 %v1249_v58  ;;  %v2059_v58 = vld [vmem:[%s2770_s1 + $0x1b8] sm:$0xff] }
0x1040   :  { %v1248_v1 = vpop.xlane.xlu2 %1247 }
0x1041   :  { %v1252_v4 = vmul.f32 %v1248_v1, %v2292_v34  ;;  %v1408_v1 = vsel %vm85_vm2, %v2059_v58, 0  ;;  %v2079_v58 = vld [vmem:[%s2770_s1 + $0x258] sm:$0xff] }
0x1043   :  { %v1254_v5 = vsub.f32 %v1244_v60, %v1252_v4  ;;  %v1411_v60 = vsel %vm85_vm2, %v2060_v53, 0  ;;  %v2058_v4 = vld [vmem:[%s2770_s1 + $0x1b0] sm:$0xff]  ;;  %v2105_v53 = vld [vmem:[%s2774_s5 + $0x18] ss:$0 sm:$0xff] }
0x1044   :  { %1425 = vmatpush.bf16.xpose.msra.mxu1 %v1411_v60 }
0x1045   :  { %v1256_v6 = vmul.f32 %v1254_v5, %v1254_v5 }
0x1047   :  { %v1258_v62 = vsel %vm85_vm2, %v1256_v6, 0.0  ;;  %v2057_v6 = vld [vmem:[%s2770_s1 + $0x1a8] sm:$0xff] }
0x1048   :  { %v1251_v7 = vpop.xlane.xlu0 %1250  ;;  %1259 = vadd.xlane.f32.xlu2 %v1258_v62  ;;  %v1402_v62 = vsel %vm85_vm2, %v2057_v6, 0  ;;  %v2077_v6 = vld [vmem:[%s2770_s1 + $0x248] sm:$0xff] }
0x1049   :  { %v1253_v21 = vmul.f32 %v1251_v7, %v2292_v34  ;;  %v2056_v7 = vld [vmem:[%s2770_s1 + $0x1a0] sm:$0xff] }
0x104b   :  { %v1255_v8 = vsub.f32 %v1245_v0, %v1253_v21  ;;  %v1399_v21 = vsel %vm85_vm2, %v2056_v7, 0  ;;  %v1634_v7 = vsel %vm85_vm2, %v2077_v6, 0 }
0x104c   :  { %1426 = vmatpush.bf16.xpose.msra.mxu1 %v1408_v1  ;;  %v1640_v1 = vsel %vm85_vm2, %v2079_v58, 0 }
0x104d   :  { %v1257_v2 = vmul.f32 %v1255_v8, %v1255_v8  ;;  %1642 = vmatpush.bf16.xpose.msrb.mxu2 %v1640_v1 }
0x104f   :  { %v1261_v9 = vsel %vm85_vm2, %v1257_v2, 0.0 }
0x1050   :  { %1262 = vadd.xlane.f32.xlu2 %v1261_v9 }
0x10bb   :  { %v1260_v27 = vpop.xlane.xlu2 %1259 }
0x10bc   :  { %v1264_v10 = vmul.f32 %v1260_v27, %v2292_v34  ;;  %v2071_v27 = vld [vmem:[%s2770_s1 + $0x218] sm:$0xff] }
0x10bd   :  { %1488 = vmatpush.bf16.msra.mxu0 %v2071_v27 }
0x10be   :  { %v1266_v11 = vadd.f32 1e-05, %v1264_v10 }
0x10c0   :  { %2157 = vrsqrt.f32 %v1266_v11  ;;  %vm1274_vm15 = vweird.f32 %v1266_v11 }
0x10c3   :  { %v1263_v12 = vpop.xlane.xlu2 %1262 }
0x10c4   :  { %v1265_v13 = vmul.f32 %v1263_v12, %v2292_v34  ;;  %v2070_v12 = vld [vmem:[%s2770_s1 + $0x210] sm:$0xff] }
0x10c5   :  { %1489 = vmatpush.bf16.msra.mxu0 %v2070_v12 }
0x10c6   :  { %v2158_v14 = vpop.eup %2157  ;;  %v1267_v15 = vadd.f32 1e-05, %v1265_v13 }
0x10c7   :  { %v1269_v16 = vmul.f32 %v2158_v14, %v1266_v11  ;;  %vm1275_vm10 = vweird.f32 %v2158_v14 }
0x10c8   :  { %2159 = vrsqrt.f32 %v1267_v15  ;;  %vm1276_vm0 = vmor %vm1274_vm15, %vm1275_vm10  ;;  %vm1284_vm3 = vweird.f32 %v1267_v15 }
0x10c9   :  { %v1270_v17 = vmul.f32 %v2158_v14, %v1269_v16  ;;  %v2069_v16 = vld [vmem:[%s2770_s1 + $0x208] sm:$0xff] }
0x10ca   :  { %1490 = vmatpush.bf16.msra.mxu0 %v2069_v16  ;;  %v2075_v16 = vld [vmem:[%s2770_s1 + $0x238] sm:$0xff] }
0x10cb   :  { %v1271_v18 = vmul.f32 0.5, %v1270_v17 }
0x10cd   :  { %v1272_v26 = vsub.f32 1.5, %v1271_v18 }
0x10ce   :  { %v2160_v19 = vpop.eup %2159 }
0x10cf   :  { %v1273_v20 = vmul.f32 %v2158_v14, %v1272_v26  ;;  %v1279_v22 = vmul.f32 %v2160_v19, %v1267_v15  ;;  %vm1285_vm1 = vweird.f32 %v2160_v19  ;;  %v2068_v26 = vld [vmem:[%s2770_s1 + $0x200] sm:$0xff] }
0x10d0   :  { %vm1286_vm4 = vmor %vm1284_vm3, %vm1285_vm1  ;;  %1491 = vmatpush.bf16.msra.mxu0 %v2068_v26 }
0x10d1   :  { %v1277_v24 = vsel %vm1276_vm0, %v2158_v14, %v1273_v20  ;;  %v1280_v3 = vmul.f32 %v2160_v19, %v1279_v22 }
0x10d2   :  { %v1288_v25 = vmul.f32 %v1277_v24, %v1254_v5  ;;  %v1405_v5 = vsel %vm85_vm2, %v2058_v4, 0  ;;  %v2078_v4 = vld [vmem:[%s2770_s1 + $0x250] sm:$0xff] }
0x10d3   :  { %v1281_v29 = vmul.f32 0.5, %v1280_v3  ;;  %1427 = vmatpush.bf16.xpose.msra.mxu1 %v1405_v5  ;;  %v1637_v5 = vsel %vm85_vm2, %v2078_v4, 0 }
0x10d4   :  { %v1291_v30 = vmul.f32 %v1290_v23, %v1288_v25  ;;  %1643 = vmatpush.bf16.xpose.msrb.mxu2 %v1637_v5 }
0x10d5   :  { %v1282_v32 = vsub.f32 1.5, %v1281_v29  ;;  %v1343_v29 = vperm.slane %v2631_v55, 4 }
0x10d6   :  { %v1294_v33 = vadd.f32 %v1293_v28, %v1291_v30 }
0x10d7   :  { %v1283_v35 = vmul.f32 %v2160_v19, %v1282_v32 }
0x10d8   :  { %v1297_v36 = vadd.f32 %v1296_v31, %v1294_v33  ;;  %v1346_v33 = vperm.slane %v2631_v55, 5 }
0x10d9   :  { %v1287_v37 = vsel %vm1286_vm4, %v2160_v19, %v1283_v35 }
0x10da   :  { %v1299_v38 = vsel %vm85_vm2, %v1297_v36, 0.0  ;;  %v1289_v39 = vmul.f32 %v1287_v37, %v1255_v8 }
0x10db   :  { %1300 = vadd.xlane.f32.xlu1 %v1299_v38  ;;  %1428 = vmatpush.bf16.xpose.msra.mxu1 %v1402_v62 }
0x10dc   :  { %v1292_v40 = vmul.f32 %v1290_v23, %v1289_v39  ;;  %1644 = vmatpush.bf16.xpose.msrb.mxu2 %v1634_v7 }
0x10de   :  { %v1295_v41 = vadd.f32 %v1293_v28, %v1292_v40 }
0x10e0   :  { %v1298_v42 = vadd.f32 %v1296_v31, %v1295_v41  ;;  %v2067_v41 = vld [vmem:[%s2770_s1 + $0x1f8] sm:$0xff] }
0x10e1   :  { %1492 = vmatpush.bf16.msra.mxu0 %v2067_v41 }
0x10e2   :  { %v1302_v43 = vsel %vm85_vm2, %v1298_v42, 0.0 }
0x10e3   :  { %1303 = vadd.xlane.f32.xlu2 %v1302_v43  ;;  %1429 = vmatpush.bf16.xpose.msra.mxu1 %v1399_v21  ;;  %v2065_v43 = vld [vmem:[%s2770_s1 + $0x1e8] sm:$0xff] }
0x114e   :  { %v1301_v49 = vpop.xlane.xlu1 %1300 }
0x114f   :  { %v1305_v51 = vmul.f32 %v1301_v49, %v2292_v34 }
0x1151   :  { %v1307_v52 = vsub.f32 %v1297_v36, %v1305_v51 }
0x1153   :  { %v1309_v56 = vmul.f32 %v1307_v52, %v1307_v52 }
0x1155   :  { %v1311_v57 = vsel %vm85_vm2, %v1309_v56, 0.0 }
0x1156   :  { %1312 = vadd.xlane.f32.xlu2 %v1311_v57  ;;  %v1304_v59 = vpop.xlane.xlu2 %1303 }
0x1157   :  { %v1306_v61 = vmul.f32 %v1304_v59, %v2292_v34 }
0x1159   :  { %v1308_v54 = vsub.f32 %v1298_v42, %v1306_v61  ;;  %v2066_v42 = vld [vmem:[%s2770_s1 + $0x1f0] sm:$0xff] }
0x115a   :  { %1493 = vmatpush.bf16.msra.mxu0 %v2066_v42 }
0x115b   :  { %v1310_v63 = vmul.f32 %v1308_v54, %v1308_v54 }
0x115d   :  { %v1314_v0 = vsel %vm85_vm2, %v1310_v63, 0.0 }
0x115e   :  { %1315 = vadd.xlane.f32.xlu2 %v1314_v0  ;;  %1494 = vmatpush.bf16.msra.mxu0 %v2065_v43 }
0x1162   :  { %1495 = vmatpush.bf16.msra.mxu0 %v2064_v44 }
0x11c9   :  { %v1313_v8 = vpop.xlane.xlu2 %1312 }
0x11ca   :  { %v1317_v2 = vmul.f32 %v1313_v8, %v2292_v34 }
0x11cc   :  { %v1319_v9 = vadd.f32 1e-05, %v1317_v2  ;;  %v2076_v2 = vld [vmem:[%s2770_s1 + $0x240] sm:$0xff] }
0x11ce   :  { %2161 = vrsqrt.f32 %v1319_v9  ;;  %vm1327_vm6 = vweird.f32 %v1319_v9 }
0x11d1   :  { %v1316_v10 = vpop.xlane.xlu2 %1315 }
0x11d2   :  { %v1318_v11 = vmul.f32 %v1316_v10, %v2292_v34 }
0x11d4   :  { %v2162_v13 = vpop.eup %2161  ;;  %v1320_v14 = vadd.f32 1e-05, %v1318_v11  ;;  %v1631_v11 = vsel %vm85_vm2, %v2076_v2, 0 }
0x11d5   :  { %v1322_v15 = vmul.f32 %v2162_v13, %v1319_v9  ;;  %vm1328_vm5 = vweird.f32 %v2162_v13  ;;  %1645 = vmatpush.bf16.xpose.msrb.mxu2 %v1631_v11 }
0x11d6   :  { %2163 = vrsqrt.f32 %v1320_v14  ;;  %vm1329_vm7 = vmor %vm1327_vm6, %vm1328_vm5  ;;  %vm1337_vm9 = vweird.f32 %v1320_v14 }
0x11d7   :  { %v1323_v17 = vmul.f32 %v2162_v13, %v1322_v15 }
0x11d9   :  { %v1324_v18 = vmul.f32 0.5, %v1323_v17  ;;  %v1628_v17 = vsel %vm85_vm2, %v2075_v16, 0 }
0x11db   :  { %v1325_v19 = vsub.f32 1.5, %v1324_v18  ;;  %v2074_v18 = vld [vmem:[%s2770_s1 + $0x230] sm:$0xff] }
0x11dc   :  { %v2164_v20 = vpop.eup %2163  ;;  %v1625_v26 = vsel %vm85_vm2, %v2074_v18, 0 }
0x11dd   :  { %v1326_v22 = vmul.f32 %v2162_v13, %v1325_v19  ;;  %v1332_v23 = vmul.f32 %v2164_v20, %v1320_v14  ;;  %vm1338_vm8 = vweird.f32 %v2164_v20  ;;  %1646 = vmatpush.bf16.xpose.msrb.mxu2 %v1628_v17  ;;  %v2073_v19 = vld [vmem:[%s2770_s1 + $0x228] sm:$0xff] }
0x11de   :  { %vm1339_vm11 = vmor %vm1337_vm9, %vm1338_vm8 }
0x11df   :  { %v1333_v24 = vmul.f32 %v2164_v20, %v1332_v23  ;;  %v1330_v3 = vsel %vm1329_vm7, %v2162_v13, %v1326_v22  ;;  %v2072_v22 = vld [vmem:[%s2770_s1 + $0x220] sm:$0xff] }
0x11e0   :  { %v1341_v30 = vmul.f32 %v1330_v3, %v1307_v52  ;;  %v1619_v23 = vsel %vm85_vm2, %v2072_v22, 0 }
0x11e1   :  { %v1334_v25 = vmul.f32 0.5, %v1333_v24 }
0x11e2   :  { %v1344_v35 = vmul.f32 %v1343_v29, %v1341_v30 }
0x11e3   :  { %v1335_v28 = vsub.f32 1.5, %v1334_v25 }
0x11e4   :  { %v1347_v38 = vadd.f32 %v1346_v33, %v1344_v35 }
0x11e5   :  { %v1336_v31 = vmul.f32 %v2164_v20, %v1335_v28  ;;  %1647 = vmatpush.bf16.xpose.msrb.mxu2 %v1625_v26 }
0x11e7   :  { %v1340_v32 = vsel %vm1339_vm11, %v2164_v20, %v1336_v31  ;;  %v1622_v20 = vsel %vm85_vm2, %v2073_v19, 0 }
0x11e8   :  { %v1342_v36 = vmul.f32 %v1340_v32, %v1308_v54 }
0x11ea   :  { %v1345_v37 = vmul.f32 %v1343_v29, %v1342_v36 }
0x11ec   :  { %v1348_v39 = vadd.f32 %v1346_v33, %v1345_v37 }
0x11ed   :  { %1648 = vmatpush.bf16.xpose.msrb.mxu2 %v1622_v20 }
0x11ee   :  { %v1349_v40 = vpack.c.bf16 %v1348_v39, %v1347_v38 }
0x11f0   :  { %1938 = vmatmul.msk.bf16.vlgmr.msra.gmra.mxu1 %vm85_vm2, %v1349_v40 }
0x11f5   :  { %1649 = vmatpush.bf16.xpose.msrb.mxu2 %v1619_v23 }
0x126d   :  { %v1431_v45 = vpop.f32.mrf.mxu1 }
0x126e   :  { %v1432_v47 = vadd.f32 %v2104_v46, %v1431_v45 }
0x1270   :  { %v1436_v50 = vmax.f32 %v1432_v47, 0.0  ;;  %v1551_v47 = vperm.slane %v2631_v55, 7 }
0x1275   :  { %v1433_v48 = vpop.f32.mrf.mxu1 }
0x1276   :  { %v1434_v49 = vadd.f32 %v2104_v46, %v1433_v48 }
0x1278   :  { %v1437_v51 = vmax.f32 %v1434_v49, 0.0 }
0x127a   :  { %v1438_v52 = vpack.c.bf16 %v1437_v51, %v1436_v50 }
0x127c   :  { %1496 = vmatmul.bf16.vlgmr.msra.gmra.mxu0 %v1438_v52 }
0x12f9   :  { %v1497_v56 = vpop.f32.mrf.mxu0 }
0x12fa   :  { %v1498_v57 = vadd.f32 %v2105_v53, %v1497_v56  ;;  %v2106_v56 = vld [vmem:[%s2777_s8] ss:$0 sm:$0xff] }
0x12fc   :  { %v1502_v59 = vadd.f32 %v1498_v57, %v1347_v38 }
0x12fe   :  { %v1504_v60 = vsel %vm85_vm2, %v1502_v59, 0.0 }
0x12ff   :  { %1505 = vadd.xlane.f32.xlu2 %v1504_v60 }
0x1301   :  { %v1499_v61 = vpop.f32.mrf.mxu0 }
0x1302   :  { %v1500_v54 = vadd.f32 %v2105_v53, %v1499_v61 }
0x1304   :  { %v1503_v63 = vadd.f32 %v1500_v54, %v1348_v39 }
0x1306   :  { %v1507_v0 = vsel %vm85_vm2, %v1503_v63, 0.0 }
0x1307   :  { %1508 = vadd.xlane.f32.xlu0 %v1507_v0 }
0x1372   :  { %v1506_v62 = vpop.xlane.xlu2 %1505 }
0x1373   :  { %v1510_v21 = vmul.f32 %v1506_v62, %v2292_v34 }
0x1375   :  { %v1512_v8 = vsub.f32 %v1502_v59, %v1510_v21 }
0x1377   :  { %v1514_v9 = vmul.f32 %v1512_v8, %v1512_v8 }
0x1379   :  { %v1516_v27 = vsel %vm85_vm2, %v1514_v9, 0.0 }
0x137a   :  { %v1509_v10 = vpop.xlane.xlu0 %1508  ;;  %1517 = vadd.xlane.f32.xlu2 %v1516_v27 }
0x137b   :  { %v1511_v12 = vmul.f32 %v1509_v10, %v2292_v34 }
0x137d   :  { %v1513_v13 = vsub.f32 %v1503_v63, %v1511_v12 }
0x137f   :  { %v1515_v14 = vmul.f32 %v1513_v13, %v1513_v13 }
0x1381   :  { %v1519_v15 = vsel %vm85_vm2, %v1515_v14, 0.0 }
0x1382   :  { %1520 = vadd.xlane.f32.xlu0 %v1519_v15 }
0x13ed   :  { %v1518_v24 = vpop.xlane.xlu2 %1517 }
0x13ee   :  { %v1522_v3 = vmul.f32 %v1518_v24, %v2292_v34 }
0x13f0   :  { %v1524_v25 = vadd.f32 1e-05, %v1522_v3 }
0x13f2   :  { %2165 = vrsqrt.f32 %v1524_v25  ;;  %vm1532_vm13 = vweird.f32 %v1524_v25 }
0x13f5   :  { %v1521_v28 = vpop.xlane.xlu0 %1520 }
0x13f6   :  { %v1523_v29 = vmul.f32 %v1521_v28, %v2292_v34  ;;  %v1548_v34 = vperm.slane %v2631_v55, 6 }
0x13f8   :  { %v2166_v30 = vpop.eup %2165  ;;  %v1525_v31 = vadd.f32 1e-05, %v1523_v29 }
0x13f9   :  { %v1527_v32 = vmul.f32 %v2166_v30, %v1524_v25  ;;  %vm1533_vm12 = vweird.f32 %v2166_v30 }
0x13fa   :  { %2167 = vrsqrt.f32 %v1525_v31  ;;  %vm1534_vm14 = vmor %vm1532_vm13, %vm1533_vm12  ;;  %vm1542_vm15 = vweird.f32 %v1525_v31 }
0x13fb   :  { %v1528_v33 = vmul.f32 %v2166_v30, %v1527_v32 }
0x13fd   :  { %v1529_v35 = vmul.f32 0.5, %v1528_v33 }
0x13ff   :  { %v1530_v36 = vsub.f32 1.5, %v1529_v35 }
0x1400   :  { %v2168_v37 = vpop.eup %2167 }
0x1401   :  { %v1531_v38 = vmul.f32 %v2166_v30, %v1530_v36  ;;  %v1537_v39 = vmul.f32 %v2168_v37, %v1525_v31  ;;  %vm1543_vm10 = vweird.f32 %v2168_v37 }
0x1402   :  { %vm1544_vm0 = vmor %vm1542_vm15, %vm1543_vm10 }
0x1403   :  { %v1538_v40 = vmul.f32 %v2168_v37, %v1537_v39  ;;  %v1535_v41 = vsel %vm1534_vm14, %v2166_v30, %v1531_v38 }
0x1404   :  { %v1546_v44 = vmul.f32 %v1535_v41, %v1512_v8 }
0x1405   :  { %v1539_v42 = vmul.f32 0.5, %v1538_v40 }
0x1406   :  { %v1549_v48 = vmul.f32 %v1548_v34, %v1546_v44 }
0x1407   :  { %v1540_v43 = vsub.f32 1.5, %v1539_v42 }
0x1408   :  { %v1552_v51 = vadd.f32 %v1551_v47, %v1549_v48 }
0x1409   :  { %v1541_v45 = vmul.f32 %v2168_v37, %v1540_v43 }
0x140b   :  { %v1545_v46 = vsel %vm1544_vm0, %v2168_v37, %v1541_v45 }
0x140c   :  { %v1547_v49 = vmul.f32 %v1545_v46, %v1513_v13 }
0x140e   :  { %v1550_v50 = vmul.f32 %v1548_v34, %v1547_v49 }
0x1410   :  { %v1553_v52 = vadd.f32 %v1551_v47, %v1550_v50 }
0x1412   :  { %v1570_v53 = vpack.c.bf16 %v1553_v52, %v1552_v51 }
0x1414   :  { %2003 = vmatmul.msk.bf16.vlgmr.msrb.gmra.mxu2 %vm85_vm2, %v1570_v53 }
0x1497   :  { %v1651_v57 = vpop.f32.mrf.mxu2 }
0x1498   :  { %v1652_v59 = vadd.f32 %v2106_v56, %v1651_v57 }
0x149a   :  { %1656 = vst [vmem:[#allocation2] sm:$0xff] %v1652_v59 }
0x149f   :  { %v1653_v55 = vpop.f32.mrf.mxu2 }
0x14a0   :  { %v1654_v60 = vadd.f32 %v2106_v56, %v1653_v55 }
0x14a2   :  { %1657 = vst [vmem:[#allocation2 + $0x8] sm:$0xff] %v1654_v60 }
0x14a3   :  { %1670 = dma.vmem_to_hbm [thread:$0]  %s1663_s24, 256, %s1665_s11, [#allocation3], %s2202_s12, %s2202_s12, %s2203_s13  }
0x14a4   :  { %2193 = dma.done.wait [#allocation3], 256  }
0x14a5   :  { %2194 = vsyncadd [#allocation3], 4294967040 }
0x14a6   :  { %1675 = vsyncpa [#allocation3], 1 }

</bundles_post_ra>
